<compile_context>
chip_gen: v7x
topology: tpu7x:2x2x1
jax: 0.10.0
libtpu: 0.0.40
codegen_flags: <defaults>
</compile_context>

<pallas_src>
import jax
import jax.numpy as jnp
from jax.experimental import pallas as pl
from jax.experimental.pallas import tpu as pltpu

# Problem sizes dictated by the module's hard-coded reshapes.
H, W = 14, 14            # spatial
C2, C128 = 2, 128        # channel split 256 = 2 * 128
CC = C2 * C128           # 256 input channels
OC = 256                 # output channels
KH = 3                   # taps of the unfold window
HW = H * W               # 196 fused (h, w) lanes
OC_BLK = 128             # OC split across a 2-wide "parallel" grid

# TODO(synk): the torch module picks shift_direction = (random.random() > 0.5)*2 - 1
# at init time; here it is a static +1 (selectable via the `shift` argument).
SHIFT = 1


def _conv_kernel(bp_ref, w_ref, o_ref):
    # bp_ref: (CC, HW + 2)     rolled activations, flat (h*W + w) lanes,
    #                          one zero column on each side.
    # w_ref : (KH, OC_BLK, CC) weight slice, contraction dim (cc) in lanes.
    # o_ref : (OC_BLK, HW)     lane-dense output block.
    lane = jax.lax.broadcasted_iota(jnp.int32, (CC, HW), 1)
    w_idx = lane % W                                             # w coord per lane

    # Tap l reads b[:, h*W + (w + l - 1)], zeroed when w + l - 1 leaves [0, W).
    rhs0 = jnp.where(w_idx == 0, 0.0, bp_ref[:, 0:HW])           # l = 0 -> w - 1
    rhs1 = bp_ref[:, 1:1 + HW]                                   # l = 1 -> w
    rhs2 = jnp.where(w_idx == W - 1, 0.0, bp_ref[:, 2:2 + HW])   # l = 2 -> w + 1

    acc = jnp.dot(w_ref[0], rhs0, preferred_element_type=jnp.float32)
    acc = acc + jnp.dot(w_ref[1], rhs1, preferred_element_type=jnp.float32)
    acc = acc + jnp.dot(w_ref[2], rhs2, preferred_element_type=jnp.float32)
    o_ref[...] = acc.astype(o_ref.dtype)


def forward_pallas(x, weight, shift=SHIFT):
    assert shift in (1, -1)

    # ---- light glue: one fused XLA pass over the ~200 KB activation ----
    # x[0] is (CC, H, W) with channel c = c2*128 + c128 (matches the torch split).
    xw = jnp.roll(x[0], shift, axis=2)                 # W roll (commutes with fused roll)
    lo, hi = xw[:C128], xw[C128:]                      # c2 = 0 / c2 = 1 halves
    if shift == 1:
        # fused (H, c2) roll by +1: out[c2=0, h] = in[c2=1, h-1]; out[c2=1, h] = in[c2=0, h]
        b = jnp.concatenate([jnp.roll(hi, 1, axis=1), lo], axis=0)
    else:
        # fused (H, c2) roll by -1: out[c2=0, h] = in[c2=1, h]; out[c2=1, h] = in[c2=0, h+1]
        b = jnp.concatenate([hi, jnp.roll(lo, -1, axis=1)], axis=0)
    bp = jnp.pad(b.reshape(CC, HW), ((0, 0), (1, 1)))  # (CC, HW + 2)

    # weight (OC, c128, c2, kh) -> (kh, OC, cc) with cc = c2*128 + c128
    w3 = jnp.transpose(weight, (3, 0, 2, 1)).reshape(KH, OC, CC)

    out = pl.pallas_call(
        _conv_kernel,
        out_shape=jax.ShapeDtypeStruct((OC, HW), x.dtype),
        grid=(OC // OC_BLK,),
        in_specs=[
            pl.BlockSpec((CC, HW + 2), lambda i: (0, 0)),
            pl.BlockSpec((KH, OC_BLK, CC), lambda i: (0, i, 0)),
        ],
        out_specs=pl.BlockSpec((OC_BLK, HW), lambda i: (i, 0)),
        compiler_params=pltpu.CompilerParams(
            dimension_semantics=("parallel",)),
    )(bp, w3)

    return out.reshape(1, OC, H, W)                    # (1, 256, 14, 14)


def forward_reference(x, weight, shift=SHIFT):
    # Pure-JAX mirror of the torch graph, for correctness checking.
    t = jnp.einsum('ilkj->iklj', x)                    # (1, H, CC, W)
    t = t.reshape(1, H, C2, C128, W)
    t = t.reshape(1, H * C2, C128, W)
    t = jnp.roll(t, shift, axis=1)
    t = t.reshape(1, H, C2, C128, W)
    t = jnp.roll(t, shift, axis=4)
    t = t.reshape(1, H * C2 * C128, W)
    tpad = jnp.pad(t, ((0, 0), (0, 0), (1, 1)))
    patches = jnp.stack([tpad[:, :, k:k + W] for k in range(KH)], axis=2)
    t = patches.reshape(1, H, C2, C128, KH, W)
    t = jnp.transpose(t, (0, 1, 3, 2, 4, 5))           # (1, H, c128, c2, kh, W)
    return jnp.einsum('mnjklo,ijkl->mino', t, weight,
                      precision='highest')             # (1, OC, H, W)


if __name__ == "__main__":
    key = jax.random.PRNGKey(0)
    kx, kw = jax.random.split(key)
    # Shapes are dictated by the module's hard-coded reshapes.
    x = jax.random.normal(kx, (1, CC, H, W), dtype=jnp.float32)
    weight = jax.random.normal(kw, (OC, C128, C2, KH), dtype=jnp.float32)

    y = jax.jit(forward_pallas)(x, weight)
    jax.block_until_ready(y)

    y_ref = forward_reference(x, weight)
    assert y.shape == (1, OC, H, W), y.shape
    err = float(jnp.max(jnp.abs(y - y_ref)) / (jnp.max(jnp.abs(y_ref)) + 1e-6))
    assert err < 1e-2, err
    print("KERNEL_OK")
</pallas_src>

<mosaic_0001>
module attributes {stable_mosaic.version = 11 : i64} {
  func.func @_conv_kernel(%arg0: i32, %arg1: memref<256x198xf32, #tpu.memory_space<vmem>>, %arg2: memref<3x128x256xf32, #tpu.memory_space<vmem>>, %arg3: memref<128x196xf32, #tpu.memory_space<vmem>>) attributes {dimension_semantics = [#tpu.dimension_semantics<parallel>], iteration_bounds = array<i64: 2>, scalar_prefetch = 0 : i64, scratch_operands = 0 : i64, tpu.core_type = #tpu.core_type<tc>, window_params = [{pipeline_mode = #tpu.pipeline_mode<synchronous>, transform_indices = @transform_0, window_bounds = array<i64: 256, 198>}, {transform_indices = @transform_1, window_bounds = array<i64: 3, 128, 256>}, {transform_indices = @transform_2, window_bounds = array<i64: 128, 196>}]} {
    %0 = tpu.iota {dimensions = array<i32: 1>} : vector<256x196xi32>
    %c14_i32 = arith.constant 14 : i32
    %c0_i32 = arith.constant 0 : i32
    %1 = arith.cmpi eq, %c14_i32, %c0_i32 : i32
    %c1_i32 = arith.constant 1 : i32
    %2 = arith.select %1, %c1_i32, %c14_i32 : i32
    %3 = vector.broadcast %2 : i32 to vector<256x196xi32>
    %4 = arith.remsi %0, %3 : vector<256x196xi32>
    %c0_i32_0 = arith.constant 0 : i32
    %5 = vector.broadcast %c0_i32_0 : i32 to vector<256x196xi32>
    %6 = arith.cmpi ne, %4, %5 : vector<256x196xi32>
    %c0_i32_1 = arith.constant 0 : i32
    %7 = vector.broadcast %c0_i32_1 : i32 to vector<256x196xi32>
    %8 = arith.cmpi slt, %4, %7 : vector<256x196xi32>
    %c0_i32_2 = arith.constant 0 : i32
    %9 = arith.cmpi slt, %2, %c0_i32_2 : i32
    %10 = vector.broadcast %9 : i1 to vector<256x196xi1>
    %11 = vector.broadcast %10 : vector<256x196xi1> to vector<256x196xi1>
    %12 = arith.xori %8, %11 : vector<256x196xi1>
    %13 = arith.andi %12, %6 : vector<256x196xi1>
    %14 = vector.broadcast %2 : i32 to vector<256x196xi32>
    %15 = arith.addi %4, %14 : vector<256x196xi32>
    %16 = arith.select %13, %15, %4 : vector<256x196xi1>, vector<256x196xi32>
    %c0_i32_3 = arith.constant 0 : i32
    %17 = vector.broadcast %c0_i32_3 : i32 to vector<256x196xi32>
    %18 = arith.cmpi eq, %16, %17 : vector<256x196xi32>
    %c0 = arith.constant 0 : index
    %c0_4 = arith.constant 0 : index
    %19 = vector.load %arg1[%c0, %c0_4] : memref<256x198xf32, #tpu.memory_space<vmem>>, vector<256x196xf32>
    %cst = arith.constant 0.000000e+00 : f32
    %20 = vector.broadcast %cst : f32 to vector<256x196xf32>
    %21 = arith.select %18, %20, %19 : vector<256x196xi1>, vector<256x196xf32>
    %c0_5 = arith.constant 0 : index
    %c1 = arith.constant 1 : index
    %22 = vector.load %arg1[%c0_5, %c1] : memref<256x198xf32, #tpu.memory_space<vmem>>, vector<256x196xf32>
    %c13_i32 = arith.constant 13 : i32
    %23 = vector.broadcast %c13_i32 : i32 to vector<256x196xi32>
    %24 = arith.cmpi eq, %16, %23 : vector<256x196xi32>
    %c0_6 = arith.constant 0 : index
    %c2 = arith.constant 2 : index
    %25 = vector.load %arg1[%c0_6, %c2] : memref<256x198xf32, #tpu.memory_space<vmem>>, vector<256x196xf32>
    %cst_7 = arith.constant 0.000000e+00 : f32
    %26 = vector.broadcast %cst_7 : f32 to vector<256x196xf32>
    %27 = arith.select %24, %26, %25 : vector<256x196xi1>, vector<256x196xf32>
    %c0_8 = arith.constant 0 : index
    %c0_9 = arith.constant 0 : index
    %c0_10 = arith.constant 0 : index
    %28 = vector.load %arg2[%c0_8, %c0_9, %c0_10] : memref<3x128x256xf32, #tpu.memory_space<vmem>>, vector<1x128x256xf32>
    %29 = vector.shape_cast %28 : vector<1x128x256xf32> to vector<128x256xf32>
    %cst_11 = arith.constant dense<0.000000e+00> : vector<128x196xf32>
    %30 = tpu.matmul %29, %21, %cst_11 {dimension_numbers = #tpu.dot_dimension_numbers<[1], [0], [0], [1], [0, 0, 1, 1], [], []>} : vector<128x256xf32>, vector<256x196xf32>, vector<128x196xf32> -> vector<128x196xf32>
    %c1_12 = arith.constant 1 : index
    %c0_13 = arith.constant 0 : index
    %c0_14 = arith.constant 0 : index
    %31 = vector.load %arg2[%c1_12, %c0_13, %c0_14] : memref<3x128x256xf32, #tpu.memory_space<vmem>>, vector<1x128x256xf32>
    %32 = vector.shape_cast %31 : vector<1x128x256xf32> to vector<128x256xf32>
    %cst_15 = arith.constant dense<0.000000e+00> : vector<128x196xf32>
    %33 = tpu.matmul %32, %22, %cst_15 {dimension_numbers = #tpu.dot_dimension_numbers<[1], [0], [0], [1], [0, 0, 1, 1], [], []>} : vector<128x256xf32>, vector<256x196xf32>, vector<128x196xf32> -> vector<128x196xf32>
    %34 = arith.addf %30, %33 : vector<128x196xf32>
    %c2_16 = arith.constant 2 : index
    %c0_17 = arith.constant 0 : index
    %c0_18 = arith.constant 0 : index
    %35 = vector.load %arg2[%c2_16, %c0_17, %c0_18] : memref<3x128x256xf32, #tpu.memory_space<vmem>>, vector<1x128x256xf32>
    %36 = vector.shape_cast %35 : vector<1x128x256xf32> to vector<128x256xf32>
    %cst_19 = arith.constant dense<0.000000e+00> : vector<128x196xf32>
    %37 = tpu.matmul %36, %27, %cst_19 {dimension_numbers = #tpu.dot_dimension_numbers<[1], [0], [0], [1], [0, 0, 1, 1], [], []>} : vector<128x256xf32>, vector<256x196xf32>, vector<128x196xf32> -> vector<128x196xf32>
    %38 = arith.addf %34, %37 : vector<128x196xf32>
    %c0_20 = arith.constant 0 : index
    %c0_21 = arith.constant 0 : index
    %39 = vector.load %arg3[%c0_20, %c0_21] : memref<128x196xf32, #tpu.memory_space<vmem>>, vector<128x196xf32>
    tpu.vector_store %arg3[%c0_20, %c0_21], %38 {strides = array<i32>} : memref<128x196xf32, #tpu.memory_space<vmem>>, vector<128x196xf32>,
    return
  }
  func.func @transform_0(%arg0: i32) -> (i32, i32) {
    %c0_i32 = arith.constant 0 : i32
    %c0_i32_0 = arith.constant 0 : i32
    %c0_i32_1 = arith.constant 0 : i32
    return %c0_i32, %c0_i32_0 : i32, i32
  }
  func.func @transform_1(%arg0: i32) -> (i32, i32, i32) {
    %c0_i32 = arith.constant 0 : i32
    %c0_i32_0 = arith.constant 0 : i32
    %c0_i32_1 = arith.constant 0 : i32
    return %c0_i32, %arg0, %c0_i32_0 : i32, i32, i32
  }
  func.func @transform_2(%arg0: i32) -> (i32, i32) {
    %c0_i32 = arith.constant 0 : i32
    %c0_i32_0 = arith.constant 0 : i32
    return %arg0, %c0_i32 : i32, i32
  }
}

</mosaic_0001>

<bundles_post_ra>
// kernel: forward_pallas.1
= control target key start
LH: loop header
LB: loop body
LE: loop exit
PB: predicated region body
PF: predicated region fallthrough
CT: control target
= control target key end

     0   :  { %s2907_s9 = smov 0   ;;  %s2909_s10 = smov 0   ;;  %s4314_s0 = inlined_call_operand.vmem [shape: f32[256,198], index: 0, kind: input, shape index: {}]   ;;  %s4315_s1 = inlined_call_operand.vmem [shape: f32[3,256,256], index: 1, kind: input, shape index: {}]   ;;  %s4316_s2 = inlined_call_operand.vmem [shape: f32[256,196], index: 2, kind: output, shape index: {}]  }
   0x1   :  { %s2911_s11 = smov 0  }
   0x2 LB: > { %s1820_s12 = sadd.s32 4294967295, %s2887_s11   ;;  %s2924_s13 = sadd.s32 1, %s2887_s11   ;;  %s2887_s11 = sphi %s2911_s11, %s4452_s11   ;;  %s2883_s10 = sphi %s2909_s10, %s4451_s10   ;;  %s2879_s9 = sphi %s2907_s9, %s4450_s9  }
   0x3   : > { %s37_s14 = ssub.s32 %s2887_s11, %s2924_s13  ;;  %s40_s15 = sadd.s32 1, %s2883_s10 }
   0x4   : > { %p38_p0 = scmp.eq.s32.totalorder %s37_s14, 0  ;;  %p47_p1 = scmp.ne.s32.totalorder %s2883_s10, %s2879_s9 }
   0x5   : > { %p48_p2 = scmp.eq.s32.totalorder %s2887_s11, 0  ;;  %p1823_p4 = scmp.ge.s32.totalorder %s2887_s11, 2 }
   0x6   : > { %s2933_s16 = scalar_select %p38_p0, %s2883_s10, %s40_s15  }
   0x7   : > { %p49_p3 = por %p48_p2, %p47_p1  ;;  %102 = sbr.rel (%p1823_p4) target bundleno = 67 (0x43), region = 20 }
   0xe   : > { %105 = sbr.rel (!%p49_p3) target bundleno = 67 (0x43), region = 24  ;;  %s107_s17 = sand.u32 (%p49_p3), 1, %s2883_s10  }
   0xf   : > { %s2154_s18 = sshll.u32 (%p49_p3), %s2887_s11, 8  ;;  %s2512_s19 = smul.u32 (%p49_p3), 768, %s107_s17 }
  0x10   : > { %s2941_s22 = scalar_lea.vmem (%p49_p3), %s4315_s1, %s2154_s18 }
  0x11   : > { %v126_v0 = vld [vmem:[%s2941_s22] sm:$0xff] (%p49_p3)  ;;  %v128_v1 = vld [vmem:[%s2941_s22 + $0x8] sm:$0xff] (%p49_p3)  ;;  %v130_v2 = vld [vmem:[%s2941_s22 + $0x10] sm:$0xff] (%p49_p3)  ;;  %s2949_s23 = scalar_lea.vmem (%p49_p3), [#allocation2], %s2512_s19 }
  0x12   : > { %v132_v3 = vld [vmem:[%s2941_s22 + $0x18] sm:$0xff] (%p49_p3)  ;;  %v134_v4 = vld [vmem:[%s2941_s22 + $0x20] sm:$0xff] (%p49_p3)  ;;  %v136_v5 = vld [vmem:[%s2941_s22 + $0x28] sm:$0xff] (%p49_p3)  ;;  %127 = vst [vmem:[%s2949_s23] sm:$0xff] (%p49_p3), %v126_v0 }
  0x13   : > { %129 = vst [vmem:[%s2949_s23 + $0x8] sm:$0xff] (%p49_p3), %v128_v1  ;;  %131 = vst [vmem:[%s2949_s23 + $0x10] sm:$0xff] (%p49_p3), %v130_v2  ;;  %v138_v6 = vld [vmem:[%s2941_s22 + $0x30] sm:$0xff] (%p49_p3)  ;;  %v140_v7 = vld [vmem:[%s2941_s22 + $0x38] sm:$0xff] (%p49_p3) }
  0x14   : > { %133 = vst [vmem:[%s2949_s23 + $0x18] sm:$0xff] (%p49_p3), %v132_v3  ;;  %135 = vst [vmem:[%s2949_s23 + $0x20] sm:$0xff] (%p49_p3), %v134_v4  ;;  %v142_v8 = vld [vmem:[%s2941_s22 + $0x40] sm:$0xff] (%p49_p3)  ;;  %v144_v9 = vld [vmem:[%s2941_s22 + $0x48] sm:$0xff] (%p49_p3) }
  0x15   : > { %137 = vst [vmem:[%s2949_s23 + $0x28] sm:$0xff] %v136_v5  ;;  %139 = vst [vmem:[%s2949_s23 + $0x30] sm:$0xff] %v138_v6  ;;  %v146_v10 = vld [vmem:[%s2941_s22 + $0x50] sm:$0xff]  ;;  %v148_v11 = vld [vmem:[%s2941_s22 + $0x58] sm:$0xff] }
  0x16   : > { %141 = vst [vmem:[%s2949_s23 + $0x38] sm:$0xff] %v140_v7  ;;  %143 = vst [vmem:[%s2949_s23 + $0x40] sm:$0xff] %v142_v8  ;;  %v150_v12 = vld [vmem:[%s2941_s22 + $0x60] sm:$0xff]  ;;  %v152_v13 = vld [vmem:[%s2941_s22 + $0x68] sm:$0xff] }
  0x17   : > { %145 = vst [vmem:[%s2949_s23 + $0x48] sm:$0xff] %v144_v9  ;;  %147 = vst [vmem:[%s2949_s23 + $0x50] sm:$0xff] %v146_v10  ;;  %v154_v14 = vld [vmem:[%s2941_s22 + $0x70] sm:$0xff]  ;;  %v156_v15 = vld [vmem:[%s2941_s22 + $0x78] sm:$0xff] }
  0x18   : > { %149 = vst [vmem:[%s2949_s23 + $0x58] sm:$0xff] %v148_v11  ;;  %151 = vst [vmem:[%s2949_s23 + $0x60] sm:$0xff] %v150_v12  ;;  %v158_v16 = vld [vmem:[%s2941_s22 + $0x80] sm:$0xff]  ;;  %v160_v17 = vld [vmem:[%s2941_s22 + $0x88] sm:$0xff] }
  0x19   : > { %153 = vst [vmem:[%s2949_s23 + $0x68] sm:$0xff] %v152_v13  ;;  %155 = vst [vmem:[%s2949_s23 + $0x70] sm:$0xff] %v154_v14  ;;  %v162_v18 = vld [vmem:[%s2941_s22 + $0x90] sm:$0xff]  ;;  %v164_v19 = vld [vmem:[%s2941_s22 + $0x98] sm:$0xff] }
  0x1a   : > { %157 = vst [vmem:[%s2949_s23 + $0x78] sm:$0xff] %v156_v15  ;;  %159 = vst [vmem:[%s2949_s23 + $0x80] sm:$0xff] %v158_v16  ;;  %v166_v20 = vld [vmem:[%s2941_s22 + $0xa0] sm:$0xff]  ;;  %v168_v21 = vld [vmem:[%s2941_s22 + $0xa8] sm:$0xff] }
  0x1b   : > { %161 = vst [vmem:[%s2949_s23 + $0x88] sm:$0xff] %v160_v17  ;;  %163 = vst [vmem:[%s2949_s23 + $0x90] sm:$0xff] %v162_v18  ;;  %v170_v22 = vld [vmem:[%s2941_s22 + $0xb0] sm:$0xff]  ;;  %v172_v23 = vld [vmem:[%s2941_s22 + $0xb8] sm:$0xff] }
  0x1c   : > { %165 = vst [vmem:[%s2949_s23 + $0x98] sm:$0xff] %v164_v19  ;;  %167 = vst [vmem:[%s2949_s23 + $0xa0] sm:$0xff] %v166_v20  ;;  %v174_v24 = vld [vmem:[%s2941_s22 + $0xc0] sm:$0xff]  ;;  %v176_v25 = vld [vmem:[%s2941_s22 + $0xc8] sm:$0xff] }
  0x1d   : > { %169 = vst [vmem:[%s2949_s23 + $0xa8] sm:$0xff] %v168_v21  ;;  %171 = vst [vmem:[%s2949_s23 + $0xb0] sm:$0xff] %v170_v22  ;;  %v178_v26 = vld [vmem:[%s2941_s22 + $0xd0] sm:$0xff]  ;;  %v180_v27 = vld [vmem:[%s2941_s22 + $0xd8] sm:$0xff] }
  0x1e   : > { %173 = vst [vmem:[%s2949_s23 + $0xb8] sm:$0xff] %v172_v23  ;;  %175 = vst [vmem:[%s2949_s23 + $0xc0] sm:$0xff] %v174_v24  ;;  %v182_v28 = vld [vmem:[%s2941_s22 + $0xe0] sm:$0xff]  ;;  %v184_v29 = vld [vmem:[%s2941_s22 + $0xe8] sm:$0xff] }
  0x1f   : > { %177 = vst [vmem:[%s2949_s23 + $0xc8] sm:$0xff] %v176_v25  ;;  %179 = vst [vmem:[%s2949_s23 + $0xd0] sm:$0xff] %v178_v26  ;;  %v186_v30 = vld [vmem:[%s2941_s22 + $0xf0] sm:$0xff]  ;;  %v188_v31 = vld [vmem:[%s2941_s22 + $0xf8] sm:$0xff] }
  0x20   : > { %181 = vst [vmem:[%s2949_s23 + $0xd8] sm:$0xff] %v180_v27  ;;  %183 = vst [vmem:[%s2949_s23 + $0xe0] sm:$0xff] %v182_v28  ;;  %v190_v32 = vld [vmem:[%s2941_s22 + $0x200] sm:$0xff]  ;;  %v192_v33 = vld [vmem:[%s2941_s22 + $0x208] sm:$0xff] }
  0x21   : > { %185 = vst [vmem:[%s2949_s23 + $0xe8] sm:$0xff] %v184_v29  ;;  %187 = vst [vmem:[%s2949_s23 + $0xf0] sm:$0xff] %v186_v30  ;;  %v194_v34 = vld [vmem:[%s2941_s22 + $0x210] sm:$0xff]  ;;  %v196_v35 = vld [vmem:[%s2941_s22 + $0x218] sm:$0xff] }
  0x22   : > { %189 = vst [vmem:[%s2949_s23 + $0xf8] sm:$0xff] %v188_v31  ;;  %191 = vst [vmem:[%s2949_s23 + $0x100] sm:$0xff] %v190_v32  ;;  %v198_v36 = vld [vmem:[%s2941_s22 + $0x220] sm:$0xff]  ;;  %v200_v37 = vld [vmem:[%s2941_s22 + $0x228] sm:$0xff] }
  0x23   : > { %193 = vst [vmem:[%s2949_s23 + $0x108] sm:$0xff] %v192_v33  ;;  %195 = vst [vmem:[%s2949_s23 + $0x110] sm:$0xff] %v194_v34  ;;  %v202_v38 = vld [vmem:[%s2941_s22 + $0x230] sm:$0xff]  ;;  %v204_v39 = vld [vmem:[%s2941_s22 + $0x238] sm:$0xff] }
  0x24   : > { %197 = vst [vmem:[%s2949_s23 + $0x118] sm:$0xff] %v196_v35  ;;  %199 = vst [vmem:[%s2949_s23 + $0x120] sm:$0xff] %v198_v36  ;;  %v206_v40 = vld [vmem:[%s2941_s22 + $0x240] sm:$0xff]  ;;  %v208_v41 = vld [vmem:[%s2941_s22 + $0x248] sm:$0xff] }
  0x25   : > { %201 = vst [vmem:[%s2949_s23 + $0x128] sm:$0xff] %v200_v37  ;;  %203 = vst [vmem:[%s2949_s23 + $0x130] sm:$0xff] %v202_v38  ;;  %v210_v42 = vld [vmem:[%s2941_s22 + $0x250] sm:$0xff]  ;;  %v212_v43 = vld [vmem:[%s2941_s22 + $0x258] sm:$0xff] }
  0x26   : > { %205 = vst [vmem:[%s2949_s23 + $0x138] sm:$0xff] %v204_v39  ;;  %207 = vst [vmem:[%s2949_s23 + $0x140] sm:$0xff] %v206_v40  ;;  %v214_v44 = vld [vmem:[%s2941_s22 + $0x260] sm:$0xff]  ;;  %v216_v45 = vld [vmem:[%s2941_s22 + $0x268] sm:$0xff] }
  0x27   : > { %209 = vst [vmem:[%s2949_s23 + $0x148] sm:$0xff] %v208_v41  ;;  %211 = vst [vmem:[%s2949_s23 + $0x150] sm:$0xff] %v210_v42  ;;  %v218_v46 = vld [vmem:[%s2941_s22 + $0x270] sm:$0xff]  ;;  %v220_v47 = vld [vmem:[%s2941_s22 + $0x278] sm:$0xff] }
  0x28   : > { %213 = vst [vmem:[%s2949_s23 + $0x158] sm:$0xff] %v212_v43  ;;  %215 = vst [vmem:[%s2949_s23 + $0x160] sm:$0xff] %v214_v44  ;;  %v222_v48 = vld [vmem:[%s2941_s22 + $0x280] sm:$0xff]  ;;  %v224_v49 = vld [vmem:[%s2941_s22 + $0x288] sm:$0xff] }
  0x29   : > { %217 = vst [vmem:[%s2949_s23 + $0x168] sm:$0xff] %v216_v45  ;;  %219 = vst [vmem:[%s2949_s23 + $0x170] sm:$0xff] %v218_v46  ;;  %v226_v50 = vld [vmem:[%s2941_s22 + $0x290] sm:$0xff]  ;;  %v228_v51 = vld [vmem:[%s2941_s22 + $0x298] sm:$0xff] }
  0x2a   : > { %221 = vst [vmem:[%s2949_s23 + $0x178] sm:$0xff] %v220_v47  ;;  %223 = vst [vmem:[%s2949_s23 + $0x180] sm:$0xff] %v222_v48  ;;  %v230_v52 = vld [vmem:[%s2941_s22 + $0x2a0] sm:$0xff]  ;;  %v232_v53 = vld [vmem:[%s2941_s22 + $0x2a8] sm:$0xff] }
  0x2b   : > { %225 = vst [vmem:[%s2949_s23 + $0x188] sm:$0xff] %v224_v49  ;;  %227 = vst [vmem:[%s2949_s23 + $0x190] sm:$0xff] %v226_v50  ;;  %v234_v54 = vld [vmem:[%s2941_s22 + $0x2b0] sm:$0xff]  ;;  %v236_v55 = vld [vmem:[%s2941_s22 + $0x2b8] sm:$0xff] }
  0x2c   : > { %229 = vst [vmem:[%s2949_s23 + $0x198] sm:$0xff] %v228_v51  ;;  %231 = vst [vmem:[%s2949_s23 + $0x1a0] sm:$0xff] %v230_v52  ;;  %v238_v56 = vld [vmem:[%s2941_s22 + $0x2c0] sm:$0xff]  ;;  %v240_v57 = vld [vmem:[%s2941_s22 + $0x2c8] sm:$0xff] }
  0x2d   : > { %233 = vst [vmem:[%s2949_s23 + $0x1a8] sm:$0xff] %v232_v53  ;;  %235 = vst [vmem:[%s2949_s23 + $0x1b0] sm:$0xff] %v234_v54  ;;  %v242_v58 = vld [vmem:[%s2941_s22 + $0x2d0] sm:$0xff]  ;;  %v244_v59 = vld [vmem:[%s2941_s22 + $0x2d8] sm:$0xff] }
  0x2e   : > { %237 = vst [vmem:[%s2949_s23 + $0x1b8] sm:$0xff] %v236_v55  ;;  %239 = vst [vmem:[%s2949_s23 + $0x1c0] sm:$0xff] %v238_v56  ;;  %v246_v60 = vld [vmem:[%s2941_s22 + $0x2e0] sm:$0xff]  ;;  %v248_v61 = vld [vmem:[%s2941_s22 + $0x2e8] sm:$0xff] }
  0x2f   : > { %241 = vst [vmem:[%s2949_s23 + $0x1c8] sm:$0xff] %v240_v57  ;;  %243 = vst [vmem:[%s2949_s23 + $0x1d0] sm:$0xff] %v242_v58  ;;  %v250_v62 = vld [vmem:[%s2941_s22 + $0x2f0] sm:$0xff]  ;;  %v252_v63 = vld [vmem:[%s2941_s22 + $0x2f8] sm:$0xff] }
  0x30   : > { %245 = vst [vmem:[%s2949_s23 + $0x1d8] sm:$0xff] %v244_v59  ;;  %247 = vst [vmem:[%s2949_s23 + $0x1e0] sm:$0xff] %v246_v60  ;;  %v254_v0 = vld [vmem:[%s2941_s22 + $0x400] sm:$0xff]  ;;  %v256_v1 = vld [vmem:[%s2941_s22 + $0x408] sm:$0xff] }
  0x31   : > { %249 = vst [vmem:[%s2949_s23 + $0x1e8] sm:$0xff] %v248_v61  ;;  %251 = vst [vmem:[%s2949_s23 + $0x1f0] sm:$0xff] %v250_v62  ;;  %v258_v2 = vld [vmem:[%s2941_s22 + $0x410] sm:$0xff]  ;;  %v260_v3 = vld [vmem:[%s2941_s22 + $0x418] sm:$0xff] }
  0x32   : > { %253 = vst [vmem:[%s2949_s23 + $0x1f8] sm:$0xff] %v252_v63  ;;  %255 = vst [vmem:[%s2949_s23 + $0x200] sm:$0xff] %v254_v0  ;;  %v262_v4 = vld [vmem:[%s2941_s22 + $0x420] sm:$0xff]  ;;  %v264_v5 = vld [vmem:[%s2941_s22 + $0x428] sm:$0xff] }
  0x33   : > { %257 = vst [vmem:[%s2949_s23 + $0x208] sm:$0xff] %v256_v1  ;;  %259 = vst [vmem:[%s2949_s23 + $0x210] sm:$0xff] %v258_v2  ;;  %v266_v6 = vld [vmem:[%s2941_s22 + $0x430] sm:$0xff]  ;;  %v268_v7 = vld [vmem:[%s2941_s22 + $0x438] sm:$0xff] }
  0x34   : > { %261 = vst [vmem:[%s2949_s23 + $0x218] sm:$0xff] %v260_v3  ;;  %263 = vst [vmem:[%s2949_s23 + $0x220] sm:$0xff] %v262_v4  ;;  %v270_v8 = vld [vmem:[%s2941_s22 + $0x440] sm:$0xff]  ;;  %v272_v9 = vld [vmem:[%s2941_s22 + $0x448] sm:$0xff] }
  0x35   : > { %265 = vst [vmem:[%s2949_s23 + $0x228] sm:$0xff] %v264_v5  ;;  %267 = vst [vmem:[%s2949_s23 + $0x230] sm:$0xff] %v266_v6  ;;  %v274_v10 = vld [vmem:[%s2941_s22 + $0x450] sm:$0xff]  ;;  %v276_v11 = vld [vmem:[%s2941_s22 + $0x458] sm:$0xff] }
  0x36   : > { %269 = vst [vmem:[%s2949_s23 + $0x238] sm:$0xff] %v268_v7  ;;  %271 = vst [vmem:[%s2949_s23 + $0x240] sm:$0xff] %v270_v8  ;;  %v278_v12 = vld [vmem:[%s2941_s22 + $0x460] sm:$0xff]  ;;  %v280_v13 = vld [vmem:[%s2941_s22 + $0x468] sm:$0xff] }
  0x37   : > { %273 = vst [vmem:[%s2949_s23 + $0x248] sm:$0xff] %v272_v9  ;;  %275 = vst [vmem:[%s2949_s23 + $0x250] sm:$0xff] %v274_v10  ;;  %v282_v14 = vld [vmem:[%s2941_s22 + $0x470] sm:$0xff]  ;;  %v284_v15 = vld [vmem:[%s2941_s22 + $0x478] sm:$0xff] }
  0x38   : > { %277 = vst [vmem:[%s2949_s23 + $0x258] sm:$0xff] %v276_v11  ;;  %279 = vst [vmem:[%s2949_s23 + $0x260] sm:$0xff] %v278_v12  ;;  %v286_v16 = vld [vmem:[%s2941_s22 + $0x480] sm:$0xff]  ;;  %v288_v17 = vld [vmem:[%s2941_s22 + $0x488] sm:$0xff] }
  0x39   : > { %281 = vst [vmem:[%s2949_s23 + $0x268] sm:$0xff] %v280_v13  ;;  %283 = vst [vmem:[%s2949_s23 + $0x270] sm:$0xff] %v282_v14  ;;  %v290_v18 = vld [vmem:[%s2941_s22 + $0x490] sm:$0xff]  ;;  %v292_v19 = vld [vmem:[%s2941_s22 + $0x498] sm:$0xff] }
  0x3a   : > { %285 = vst [vmem:[%s2949_s23 + $0x278] sm:$0xff] %v284_v15  ;;  %287 = vst [vmem:[%s2949_s23 + $0x280] sm:$0xff] %v286_v16  ;;  %v294_v20 = vld [vmem:[%s2941_s22 + $0x4a0] sm:$0xff]  ;;  %v296_v21 = vld [vmem:[%s2941_s22 + $0x4a8] sm:$0xff] }
  0x3b   : > { %289 = vst [vmem:[%s2949_s23 + $0x288] sm:$0xff] %v288_v17  ;;  %291 = vst [vmem:[%s2949_s23 + $0x290] sm:$0xff] %v290_v18  ;;  %v298_v22 = vld [vmem:[%s2941_s22 + $0x4b0] sm:$0xff]  ;;  %v300_v23 = vld [vmem:[%s2941_s22 + $0x4b8] sm:$0xff] }
  0x3c   : > { %293 = vst [vmem:[%s2949_s23 + $0x298] sm:$0xff] %v292_v19  ;;  %295 = vst [vmem:[%s2949_s23 + $0x2a0] sm:$0xff] %v294_v20  ;;  %v302_v24 = vld [vmem:[%s2941_s22 + $0x4c0] sm:$0xff]  ;;  %v304_v25 = vld [vmem:[%s2941_s22 + $0x4c8] sm:$0xff] }
  0x3d   : > { %297 = vst [vmem:[%s2949_s23 + $0x2a8] sm:$0xff] %v296_v21  ;;  %299 = vst [vmem:[%s2949_s23 + $0x2b0] sm:$0xff] %v298_v22  ;;  %v306_v26 = vld [vmem:[%s2941_s22 + $0x4d0] sm:$0xff]  ;;  %v308_v27 = vld [vmem:[%s2941_s22 + $0x4d8] sm:$0xff] }
  0x3e   : > { %301 = vst [vmem:[%s2949_s23 + $0x2b8] sm:$0xff] %v300_v23  ;;  %303 = vst [vmem:[%s2949_s23 + $0x2c0] sm:$0xff] %v302_v24  ;;  %v310_v28 = vld [vmem:[%s2941_s22 + $0x4e0] sm:$0xff]  ;;  %v312_v29 = vld [vmem:[%s2941_s22 + $0x4e8] sm:$0xff] }
  0x3f   : > { %305 = vst [vmem:[%s2949_s23 + $0x2c8] sm:$0xff] %v304_v25  ;;  %307 = vst [vmem:[%s2949_s23 + $0x2d0] sm:$0xff] %v306_v26  ;;  %v314_v30 = vld [vmem:[%s2941_s22 + $0x4f0] sm:$0xff]  ;;  %v316_v31 = vld [vmem:[%s2941_s22 + $0x4f8] sm:$0xff] }
  0x40   : > { %309 = vst [vmem:[%s2949_s23 + $0x2d8] sm:$0xff] %v308_v27  ;;  %311 = vst [vmem:[%s2949_s23 + $0x2e0] sm:$0xff] %v310_v28 }
  0x41   : > { %313 = vst [vmem:[%s2949_s23 + $0x2e8] sm:$0xff] %v312_v29  ;;  %315 = vst [vmem:[%s2949_s23 + $0x2f0] sm:$0xff] %v314_v30 }
  0x42   : > { %317 = vst [vmem:[%s2949_s23 + $0x2f8] sm:$0xff] %v316_v31 }
  0x43 PF: > { %p1827_p5 = scmp.ge.s32.totalorder %s2887_s11, 1  ;;  %p322_p6 = scmp.lt.s32.totalorder %s2887_s11, 3 }
  0x45   : > { %p323_p7 = pnand %p1827_p5, %p322_p6 }
  0x47   : > { %326 = sbr.rel (%p323_p7) target bundleno = 578 (0x242), region = 47 }
  0x4e   : > { %v3142_v32 = vld [vmem:[%s4314_s0 + $0x20] sm:$0xff]  ;;  %v3147_v33 = vld [vmem:[%s4314_s0 + $0x28] sm:$0xff]  ;;  %v3152_v34 = vld [vmem:[%s4314_s0 + $0x30] sm:$0xff]  ;;  %v359_v35 = vlaneseq  ;;  %s2889_s20 = smov 127   ;;  %v4317_v25 = vmov 0   ;;  %s329_s26 = sand.u32 1, %s2879_s9  }
  0x4f   : > { %v3157_v36 = vld [vmem:[%s4314_s0 + $0x38] sm:$0xff]  ;;  %v3161_v37 = vpack.i.bf16 %v3147_v33, %v3142_v32  ;;  %v3166_v38 = vld [vmem:[%s4314_s0] sm:$0xff]  ;;  %v3171_v39 = vld [vmem:[%s4314_s0 + $0x8] sm:$0xff]  ;;  %s2513_s27 = smul.u32 768, %s329_s26  ;;  %s2891_s28 = smov 126   ;;  %vm1078_vm12 = vcmask 1039360  }
  0x50   : > { %v3175_v40 = vpack.i.bf16 %v3171_v39, %v3166_v38  ;;  %v3180_v41 = vld [vmem:[%s4314_s0 + $0x10] sm:$0xff]  ;;  %v3185_v42 = vld [vmem:[%s4314_s0 + $0x18] sm:$0xff]  ;;  %v3196_v44 = vpack.i.bf16 %v3157_v36, %v3152_v34  ;;  %v3206_v46 = vld [vmem:[%s4314_s0 + $0x40] sm:$0xff]  ;;  %v3213_v48 = vand.u32 127, %v359_v35  ;;  %vm724_vm14 = vcmask 1031168  }
  0x51   : > { %4359 = vst [vmem:[#allocation3_spill] sm:$0xff] %v3161_v37  ;;  %v3190_v43 = vld [vmem:[%s4314_s0 + $0x50] sm:$0xff]  ;;  %2556 = vrot.lane.b32.xlu1 %v3161_v37, %s2889_s20  ;;  %v3201_v45 = vld [vmem:[%s4314_s0 + $0x58] sm:$0xff]  ;;  %v3211_v47 = vld [vmem:[%s4314_s0 + $0x48] sm:$0xff]  ;;  %v3219_v49 = vpack.i.bf16 %v3185_v42, %v3180_v41  ;;  %s3725_s9 = scalar_lea.vmem [#allocation2], %s2513_s27 }
  0x52   : > { %4360 = vst [vmem:[#allocation4_spill] sm:$0xff] %v3175_v40  ;;  %4361 = vst [vmem:[#allocation5_spill] sm:$0xff] %v3196_v44  ;;  %2546 = vrot.lane.b32.xlu0 %v3175_v40, %s2889_s20  ;;  %v3224_v50 = vld [vmem:[%s4314_s0 + $0x70] sm:$0xff]  ;;  %v3229_v51 = vld [vmem:[%s4314_s0 + $0x78] sm:$0xff]  ;;  %v3238_v53 = vpack.i.bf16 %v3201_v45, %v3190_v43  ;;  %v3242_v54 = vpack.i.bf16 %v3211_v47, %v3206_v46  ;;  %v3264_v59 = vadd.s32 128, %v3213_v48 }
  0x53   : > { %4362 = vst [vmem:[#allocation6_spill] sm:$0xff] %v3219_v49  ;;  %v3234_v52 = vld [vmem:[%s4314_s0 + $0x60] sm:$0xff]  ;;  %v3247_v55 = vld [vmem:[%s4314_s0 + $0x68] sm:$0xff]  ;;  %v3252_v56 = vld [vmem:[%s4314_s0 + $0x90] sm:$0xff]  ;;  %v3261_v58 = vpack.i.bf16 %v3229_v51, %v3224_v50 }
  0x54   : > { %4363 = vst [vmem:[#allocation7_spill] sm:$0xff] %v3238_v53  ;;  %4364 = vst [vmem:[#allocation8_spill] sm:$0xff] %v3242_v54  ;;  %v3257_v57 = vld [vmem:[%s4314_s0 + $0x98] sm:$0xff]  ;;  %v3269_v60 = vld [vmem:[%s4314_s0 + $0x80] sm:$0xff]  ;;  %v3283_v63 = vpack.i.bf16 %v3247_v55, %v3234_v52  ;;  %v3311_v5 = vmul.u32.u64.low 2454267026, %v3264_v59  ;;  %v3312_v6 = vmul.u32.u64.high 2454267026, %v3264_v59, %v3311_v5 }
  0x55   : > { %4365 = vst [vmem:[#allocation9_spill] sm:$0xff] %v3261_v58  ;;  %v3274_v61 = vld [vmem:[%s4314_s0 + $0x88] sm:$0xff]  ;;  %v3279_v62 = vld [vmem:[%s4314_s0 + $0xb0] sm:$0xff]  ;;  %v3287_v0 = vpack.i.bf16 %v3257_v57, %v3252_v56  ;;  %2561 = vrot.lane.b32.xlu1 %v3196_v44, %s2889_s20  ;;  %v3294_v1 = vld [vmem:[%s4314_s0 + $0xb8] sm:$0xff] }
  0x56   : > { %4366 = vst [vmem:[#allocation10_spill] sm:$0xff] %v3283_v63  ;;  %v3299_v2 = vld [vmem:[%s4314_s0 + $0xa0] sm:$0xff]  ;;  %v3304_v3 = vld [vmem:[%s4314_s0 + $0xa8] sm:$0xff]  ;;  %v3308_v4 = vpack.i.bf16 %v3274_v61, %v3269_v60  ;;  %2551 = vrot.lane.b32.xlu0 %v3219_v49, %s2889_s20  ;;  %v3319_v7 = vld [vmem:[%s4314_s0 + $0xd0] sm:$0xff]  ;;  %v3333_v10 = vpack.i.bf16 %v3294_v1, %v3279_v62  ;;  %vm382_vm0 = vc.u32 %v3311_v5, 2454267026 }
  0x57   : > { %4367 = vst [vmem:[#allocation11_spill] sm:$0xff] %v3287_v0  ;;  %v3324_v8 = vld [vmem:[%s4314_s0 + $0xd8] sm:$0xff]  ;;  %v3329_v9 = vld [vmem:[%s4314_s0 + $0xc0] sm:$0xff]  ;;  %v3337_v11 = vpack.i.bf16 %v3304_v3, %v3299_v2  ;;  %v3342_v12 = vld [vmem:[%s4314_s0 + $0xc8] sm:$0xff]  ;;  %v383_v26 = vsel %vm382_vm0, 1, %v4317_v25 }
  0x58   : > { %4368 = vst [vmem:[#allocation12_spill] sm:$0xff] %v3308_v4  ;;  %v3347_v13 = vld [vmem:[%s4314_s0 + $0xf0] sm:$0xff]  ;;  %v3352_v14 = vld [vmem:[%s4314_s0 + $0xf8] sm:$0xff]  ;;  %v3356_v15 = vpack.i.bf16 %v3324_v8, %v3319_v7  ;;  %v3361_v16 = vld [vmem:[%s4314_s0 + $0xe0] sm:$0xff]  ;;  %v3375_v19 = vpack.i.bf16 %v3342_v12, %v3329_v9 }
  0x59   : > { %4369 = vst [vmem:[#allocation13_spill] sm:$0xff] %v3347_v13  ;;  %v3366_v17 = vld [vmem:[%s4314_s0 + $0xe8] sm:$0xff]  ;;  %v3371_v18 = vld [vmem:[%s4314_s0 + $0x110] sm:$0xff]  ;;  %v3379_v20 = vpack.i.bf16 %v3352_v14, %v3347_v13  ;;  %2571 = vrot.lane.b32.xlu1 %v3238_v53, %s2889_s20  ;;  %v3386_v21 = vld [vmem:[%s4314_s0 + $0x118] sm:$0xff]  ;;  %v384_v53 = vadd.s32 %v3312_v6, %v383_v26 }
  0x5a   : > { %4370 = vst [vmem:[#allocation14_spill] sm:$0xff] %v3371_v18  ;;  %4371 = vst [vmem:[#allocation15_spill] sm:$0xff] %v3386_v21  ;;  %v3391_v22 = vld [vmem:[%s4314_s0 + $0x100] sm:$0xff]  ;;  %v3396_v23 = vld [vmem:[%s4314_s0 + $0x108] sm:$0xff]  ;;  %v3400_v24 = vpack.i.bf16 %v3366_v17, %v3361_v16  ;;  %2566 = vrot.lane.b32.xlu0 %v3242_v54, %s2889_s20  ;;  %v3422_v30 = vpack.i.bf16 %v3386_v21, %v3371_v18 }
  0x5b   : > { %4372 = vst [vmem:[#allocation16_spill] sm:$0xff] %v3391_v22  ;;  %4373 = vst [vmem:[#allocation17_spill] sm:$0xff] %v3396_v23  ;;  %v3408_v27 = vld [vmem:[%s4314_s0 + $0x130] sm:$0xff]  ;;  %v3413_v28 = vld [vmem:[%s4314_s0 + $0x138] sm:$0xff]  ;;  %v3426_v31 = vpack.i.bf16 %v3396_v23, %v3391_v22 }
  0x5c   : > { %4374 = vst [vmem:[#allocation18_spill] sm:$0xff] %v3408_v27  ;;  %4375 = vst [vmem:[#allocation19_spill] sm:$0xff] %v3413_v28  ;;  %v3418_v29 = vld [vmem:[%s4314_s0 + $0x120] sm:$0xff]  ;;  %v3431_v35 = vld [vmem:[%s4314_s0 + $0x128] sm:$0xff]  ;;  %v3445_v54 = vpack.i.bf16 %v3413_v28, %v3408_v27 }
  0x5d   : > { %4376 = vst [vmem:[#allocation20_spill] sm:$0xff] %v3418_v29  ;;  %4377 = vst [vmem:[#allocation21_spill] sm:$0xff] %v3431_v35  ;;  %v3436_v5 = vld [vmem:[%s4314_s0 + $0x150] sm:$0xff]  ;;  %v3441_v25 = vld [vmem:[%s4314_s0 + $0x158] sm:$0xff]  ;;  %v3465_v27 = vpack.i.bf16 %v3431_v35, %v3418_v29  ;;  %2581 = vrot.lane.b32.xlu1 %v3261_v58, %s2889_s20  ;;  %v385_v58 = vshrl.u32 %v384_v53, 3 }
  0x5e   : > { %4378 = vst [vmem:[#allocation22_spill] sm:$0xff] %v3436_v5  ;;  %4379 = vst [vmem:[#allocation23_spill] sm:$0xff] %v3441_v25  ;;  %v3451_v37 = vld [vmem:[%s4314_s0 + $0x140] sm:$0xff]  ;;  %v3456_v44 = vld [vmem:[%s4314_s0 + $0x148] sm:$0xff]  ;;  %v3469_v6 = vpack.i.bf16 %v3441_v25, %v3436_v5  ;;  %2576 = vrot.lane.b32.xlu0 %v3283_v63, %s2889_s20 }
  0x5f   : > { %4380 = vst [vmem:[#allocation24_spill] sm:$0xff] %v3451_v37  ;;  %4381 = vst [vmem:[#allocation25_spill] sm:$0xff] %v3456_v44  ;;  %v3461_v40 = vld [vmem:[%s4314_s0 + $0x170] sm:$0xff]  ;;  %v3476_v26 = vld [vmem:[%s4314_s0 + $0x178] sm:$0xff]  ;;  %v3490_v5 = vpack.i.bf16 %v3456_v44, %v3451_v37 }
  0x60   : > { %4382 = vst [vmem:[#allocation26_spill] sm:$0xff] %v3461_v40  ;;  %4383 = vst [vmem:[#allocation27_spill] sm:$0xff] %v3476_v26  ;;  %v3481_v28 = vld [vmem:[%s4314_s0 + $0x160] sm:$0xff]  ;;  %v3486_v29 = vld [vmem:[%s4314_s0 + $0x168] sm:$0xff]  ;;  %v3511_v53 = vpack.i.bf16 %v3476_v26, %v3461_v40 }
  0x61   : > { %4384 = vst [vmem:[#allocation28_spill] sm:$0xff] %v3481_v28  ;;  %4385 = vst [vmem:[#allocation29_spill] sm:$0xff] %v3486_v29  ;;  %v3497_v25 = vld [vmem:[%s4314_s0 + $0x190] sm:$0xff]  ;;  %v3502_v35 = vld [vmem:[%s4314_s0 + $0x198] sm:$0xff]  ;;  %v3515_v63 = vpack.i.bf16 %v3486_v29, %v3481_v28  ;;  %v386_v28 = vmul.u32 14, %v385_v58  ;;  %2591 = vrot.lane.b32.xlu1 %v3287_v0, %s2889_s20 }
  0x62   : > { %4386 = vst [vmem:[#allocation30_spill] sm:$0xff] %v3497_v25  ;;  %4387 = vst [vmem:[#allocation31_spill] sm:$0xff] %v3502_v35  ;;  %v3507_v18 = vld [vmem:[%s4314_s0 + $0x180] sm:$0xff]  ;;  %v3520_v37 = vld [vmem:[%s4314_s0 + $0x188] sm:$0xff]  ;;  %v3534_v40 = vpack.i.bf16 %v3502_v35, %v3497_v25  ;;  %2586 = vrot.lane.b32.xlu0 %v3308_v4, %s2889_s20 }
  0x63   : > { %4388 = vst [vmem:[#allocation32_spill] sm:$0xff] %v3507_v18  ;;  %4389 = vst [vmem:[#allocation33_spill] sm:$0xff] %v3520_v37  ;;  %v3525_v44 = vld [vmem:[%s4314_s0 + $0x1b0] sm:$0xff]  ;;  %v3530_v22 = vld [vmem:[%s4314_s0 + $0x1b8] sm:$0xff]  ;;  %v3553_v25 = vpack.i.bf16 %v3520_v37, %v3507_v18 }
  0x64   : > { %4390 = vst [vmem:[#allocation34_spill] sm:$0xff] %v3525_v44  ;;  %4391 = vst [vmem:[#allocation35_spill] sm:$0xff] %v3530_v22  ;;  %v3539_v26 = vld [vmem:[%s4314_s0 + $0x1a0] sm:$0xff]  ;;  %v3544_v29 = vld [vmem:[%s4314_s0 + $0x1a8] sm:$0xff]  ;;  %v3557_v58 = vpack.i.bf16 %v3530_v22, %v3525_v44  ;;  %v387_v22 = vsub.s32 %v3264_v59, %v386_v28 }
  0x65   : > { %4392 = vst [vmem:[#allocation36_spill] sm:$0xff] %v3539_v26  ;;  %4393 = vst [vmem:[#allocation37_spill] sm:$0xff] %v3544_v29  ;;  %v3549_v49 = vld [vmem:[%s4314_s0 + $0x1d0] sm:$0xff]  ;;  %v3564_v35 = vld [vmem:[%s4314_s0 + $0x1d8] sm:$0xff]  ;;  %v3578_v44 = vpack.i.bf16 %v3544_v29, %v3539_v26  ;;  %2601 = vrot.lane.b32.xlu1 %v3333_v10, %s2889_s20 }
  0x66   : > { %4394 = vst [vmem:[#allocation38_spill] sm:$0xff] %v3549_v49  ;;  %4395 = vst [vmem:[#allocation39_spill] sm:$0xff] %v3564_v35  ;;  %v3569_v21 = vld [vmem:[%s4314_s0 + $0x1c0] sm:$0xff]  ;;  %v3574_v18 = vld [vmem:[%s4314_s0 + $0x1c8] sm:$0xff]  ;;  %v3585_v0 = vpack.i.bf16 %v3564_v35, %v3549_v49  ;;  %vm391_vm1 = vcmp.ne.s32.totalorder %v387_v22, 0  ;;  %vm393_vm2 = vcmp.lt.s32.totalorder %v387_v22, 0  ;;  %v2224_v35 = vpack.c.bf16 %v3185_v42, %v3171_v39  ;;  %2596 = vrot.lane.b32.xlu0 %v3337_v11, %s2889_s20 }
  0x67   : > { %4396 = vst [vmem:[#allocation40_spill] sm:$0xff] %v3569_v21  ;;  %4397 = vst [vmem:[#allocation41_spill] sm:$0xff] %v3574_v18  ;;  %v3589_v37 = vpack.i.bf16 %v3574_v18, %v3569_v21  ;;  %v3594_v23 = vld [vmem:[%s4314_s0 + $0x1f0] sm:$0xff]  ;;  %v3599_v59 = vld [vmem:[%s4314_s0 + $0x1f8] sm:$0xff]  ;;  %v397_v28 = vadd.s32 14, %v387_v22  ;;  %v4402_v42 = vmov 0  }
  0x68   : > { %4398 = vst [vmem:[#allocation42_spill] sm:$0xff] %v3594_v23  ;;  %v3604_v49 = vld [vmem:[%s4314_s0 + $0x1e0] sm:$0xff]  ;;  %v3609_v21 = vld [vmem:[%s4314_s0 + $0x1e8] sm:$0xff]  ;;  %vm395_vm3 = vmand %vm393_vm2, %vm391_vm1  ;;  %v3614_v18 = vmul.u32.u64.low 2454267026, %v3213_v48  ;;  %v3615_v26 = vmul.u32.u64.high 2454267026, %v3213_v48, %v3614_v18  ;;  %v3619_v29 = vpack.i.bf16 %v3599_v59, %v3594_v23  ;;  %vm1724_vm2 = vcmask 556032  }
  0x69   : > { %v3623_v4 = vsel %vm395_vm3, %v397_v28, %v387_v22  ;;  %v3627_v13 = vpack.i.bf16 %v3609_v21, %v3604_v49  ;;  %2611 = vrot.lane.b32.xlu1 %v3356_v15, %s2889_s20 }
  0x6a   : > { %4399 = vst [vmem:[#allocation43_spill] sm:$0xff] %v3623_v4  ;;  %vm2156_vm4 = vcmp.ne.s32.totalorder %v3623_v4, 0  ;;  %vm368_vm5 = vc.u32 %v3614_v18, 2454267026  ;;  %2606 = vrot.lane.b32.xlu0 %v3375_v19, %s2889_s20 }
  0x6b   : > { %vm3632_vm6 = vmpackc.low %vm2156_vm4, %vm2156_vm4  ;;  %v369_v23 = vsel %vm368_vm5, 1, %v4402_v42 }
  0x6c   : > { %2226 = vmatprep.subr.msk.bf16.mxu0 %vm3632_vm6, %v2224_v35  ;;  %v370_v22 = vadd.s32 %v3615_v26, %v369_v23  ;;  %v2227_v23 = vpack.c.bf16 %v3180_v41, %v3166_v38  ;;  %v2230_v26 = vpack.c.bf16 %v3157_v36, %v3147_v33  ;;  %v2236_v33 = vpack.c.bf16 %v3201_v45, %v3211_v47  ;;  %v886_v47 = vld [vmem:[%s3725_s9 + $0x8] sm:$0xff] }
  0x6d   : > { %2621 = vrot.lane.b32.xlu1 %v3379_v20, %s2889_s20  ;;  %v2245_v36 = vpack.c.bf16 %v3224_v50, %v3234_v52  ;;  %v2248_v38 = vpack.c.bf16 %v3257_v57, %v3274_v61  ;;  %v2251_v41 = vpack.c.bf16 %v3252_v56, %v3269_v60  ;;  %v2257_v45 = vpack.c.bf16 %v3279_v62, %v3299_v2  ;;  %v1832_v52 = vld [vmem:[%s3725_s9 + $0x108] sm:$0xff]  ;;  %v4406_v57 = vld [vmem:[#allocation17_spill] sm:$0xff]  ;;  %v4407_v60 = vld [vmem:[#allocation15_spill] sm:$0xff] }
  0x6e   : > { %v371_v28 = vshrl.u32 %v370_v22, 3  ;;  %2616 = vrot.lane.b32.xlu0 %v3400_v24, %s2889_s20  ;;  %1400 = vmatprep.mubr.f32.mxu0 %v886_v47  ;;  %v2263_v50 = vpack.c.bf16 %v3319_v7, %v3329_v9  ;;  %v2272_v61 = vpack.c.bf16 %v4407_v60, %v4406_v57  ;;  %v4408_v62 = vld [vmem:[#allocation6_spill] sm:$0xff]  ;;  %v4411_v7 = vld [vmem:[#allocation4_spill] sm:$0xff]  ;;  %v4413_v9 = vld [vmem:[#allocation19_spill] sm:$0xff] }
  0x6f   : > { %1239 = vmatprep.mubr.f32.mxu1 %v1832_v52  ;;  %v4410_v2 = vld [vmem:[#allocation14_spill] sm:$0xff]  ;;  %v4431_v52 = vld [vmem:[#allocation31_spill] sm:$0xff]  ;;  %v4433_v57 = vld [vmem:[#allocation32_spill] sm:$0xff] }
  0x70   : > { %v372_v4 = vmul.u32 14, %v371_v28  ;;  %v4417_v28 = vld [vmem:[#allocation3_spill] sm:$0xff]  ;;  %v4434_v60 = vld [vmem:[#allocation30_spill] sm:$0xff] }
  0x71   : > { %2631 = vrot.lane.b32.xlu1 %v3422_v30, %s2889_s20 }
  0x72   : > { %v373_v18 = vsub.s32 %v3213_v48, %v372_v4  ;;  %2626 = vrot.lane.b32.xlu0 %v3426_v31, %s2889_s20  ;;  %v2233_v4 = vpack.c.bf16 %v3152_v34, %v3142_v32  ;;  %v2239_v32 = vpack.c.bf16 %v3190_v43, %v3206_v46  ;;  %v2242_v34 = vpack.c.bf16 %v3229_v51, %v3247_v55  ;;  %v4405_v55 = vld [vmem:[#allocation13_spill] sm:$0xff] }
  0x73   : > { %v2254_v43 = vpack.c.bf16 %v3294_v1, %v3304_v3  ;;  %v2260_v46 = vpack.c.bf16 %v3324_v8, %v3342_v12  ;;  %v2266_v51 = vpack.c.bf16 %v3352_v14, %v3366_v17  ;;  %v2269_v56 = vpack.c.bf16 %v4405_v55, %v3361_v16  ;;  %v4409_v1 = vld [vmem:[#allocation16_spill] sm:$0xff]  ;;  %v4412_v8 = vld [vmem:[#allocation21_spill] sm:$0xff]  ;;  %v4416_v17 = vld [vmem:[#allocation18_spill] sm:$0xff] }
  0x74   : > { %vm390_vm7 = vcmp.ne.s32.totalorder %v373_v18, 0  ;;  %vm392_vm8 = vcmp.lt.s32.totalorder %v373_v18, 0  ;;  %v396_v35 = vadd.s32 14, %v373_v18  ;;  %v2275_v3 = vpack.c.bf16 %v4410_v2, %v4409_v1  ;;  %v4414_v14 = vld [vmem:[#allocation5_spill] sm:$0xff]  ;;  %v4415_v16 = vld [vmem:[#allocation20_spill] sm:$0xff]  ;;  %v4437_v2 = vld [vmem:[#allocation35_spill] sm:$0xff] }
  0x75   : > { %vm394_vm9 = vmand %vm392_vm8, %vm390_vm7  ;;  %2641 = vrot.lane.b32.xlu1 %v3445_v54, %s2889_s20  ;;  %v2278_v12 = vpack.c.bf16 %v4413_v9, %v4412_v8  ;;  %v2281_v22 = vpack.c.bf16 %v4416_v17, %v4415_v16  ;;  %v4436_v1 = vld [vmem:[#allocation37_spill] sm:$0xff]  ;;  %v4439_v8 = vld [vmem:[#allocation34_spill] sm:$0xff] }
  0x76   : > { %v3657_v42 = vsel %vm394_vm9, %v396_v35, %v373_v18  ;;  %2636 = vrot.lane.b32.xlu0 %v3465_v27, %s2889_s20  ;;  %v4418_v18 = vld [vmem:[#allocation25_spill] sm:$0xff]  ;;  %v4419_v35 = vld [vmem:[#allocation23_spill] sm:$0xff]  ;;  %v4443_v17 = vld [vmem:[#allocation38_spill] sm:$0xff] }
  0x77   : > { %vm2157_vm10 = vcmp.ne.s32.totalorder %v3657_v42, 0  ;;  %vm2159_vm15 = vcmp.ne.s32.totalorder %v3657_v42, 13 }
  0x78   : > { %vm3660_vm11 = vmpackc.low %vm2157_vm10, %vm2157_vm10 }
  0x79   : > { %2229 = vmatpush1.bf16.msk.msra.mxu0 %vm3660_vm11, %v2227_v23  ;;  %2651 = vrot.lane.b32.xlu1 %v3469_v6, %s2889_s20  ;;  %v2284_v23 = vpack.c.bf16 %v4419_v35, %v4418_v18  ;;  %vm3952_vm1 = vmpackc.low %vm2159_vm15, %vm2159_vm15 }
  0x7a   : > { %2232 = vmatprep.subr.msk.bf16.mxu0 %vm3632_vm6, %v2230_v26  ;;  %2646 = vrot.lane.b32.xlu0 %v3490_v5, %s2889_s20  ;;  %v4420_v26 = vld [vmem:[#allocation7_spill] sm:$0xff] }
  0x7d   : > { %2235 = vmatpush1.bf16.msk.msra.mxu0 %vm3660_vm11, %v2233_v4  ;;  %2661 = vrot.lane.b32.xlu1 %v3511_v53, %s2889_s20  ;;  %v4421_v4 = vld [vmem:[#allocation24_spill] sm:$0xff] }
  0x7e   : > { %2238 = vmatprep.subr.msk.bf16.mxu0 %vm3632_vm6, %v2236_v33  ;;  %2656 = vrot.lane.b32.xlu0 %v3515_v63, %s2889_s20  ;;  %v4422_v33 = vld [vmem:[#allocation22_spill] sm:$0xff] }
  0x81   : > { %2241 = vmatpush1.bf16.msk.msra.mxu0 %vm3660_vm11, %v2239_v32  ;;  %2671 = vrot.lane.b32.xlu1 %v3534_v40, %s2889_s20  ;;  %v2287_v32 = vpack.c.bf16 %v4422_v33, %v4421_v4 }
  0x82   : > { %2244 = vmatprep.subr.msk.bf16.mxu0 %vm3632_vm6, %v2242_v34  ;;  %2666 = vrot.lane.b32.xlu0 %v3553_v25, %s2889_s20  ;;  %v4423_v34 = vld [vmem:[#allocation8_spill] sm:$0xff] }
  0x85   : > { %2247 = vmatpush1.bf16.msk.msra.mxu0 %vm3660_vm11, %v2245_v36  ;;  %2681 = vrot.lane.b32.xlu1 %v3557_v58, %s2889_s20  ;;  %v4424_v36 = vld [vmem:[#allocation29_spill] sm:$0xff] }
  0x86   : > { %2250 = vmatprep.subr.msk.bf16.mxu0 %vm3632_vm6, %v2248_v38  ;;  %2676 = vrot.lane.b32.xlu0 %v3578_v44, %s2889_s20  ;;  %v4425_v38 = vld [vmem:[#allocation27_spill] sm:$0xff] }
  0x89   : > { %2253 = vmatpush1.bf16.msk.msra.mxu0 %vm3660_vm11, %v2251_v41  ;;  %2691 = vrot.lane.b32.xlu1 %v3585_v0, %s2889_s20  ;;  %v2290_v41 = vpack.c.bf16 %v4425_v38, %v4424_v36 }
  0x8a   : > { %2256 = vmatprep.subr.msk.bf16.mxu0 %vm3632_vm6, %v2254_v43  ;;  %2686 = vrot.lane.b32.xlu0 %v3589_v37, %s2889_s20  ;;  %v4426_v43 = vld [vmem:[#allocation9_spill] sm:$0xff] }
  0x8d   : > { %2259 = vmatpush1.bf16.msk.msra.mxu0 %vm3660_vm11, %v2257_v45  ;;  %2701 = vrot.lane.b32.xlu1 %v3619_v29, %s2889_s20  ;;  %v4427_v45 = vld [vmem:[#allocation28_spill] sm:$0xff] }
  0x8e   : > { %2262 = vmatprep.subr.msk.bf16.mxu0 %vm3632_vm6, %v2260_v46  ;;  %2696 = vrot.lane.b32.xlu0 %v3627_v13, %s2889_s20  ;;  %v4428_v46 = vld [vmem:[#allocation26_spill] sm:$0xff]  ;;  %s1828_s20 = sshll.u32 %s1820_s12, 4 }
  0x8f   : > { %v2293_v47 = vpack.c.bf16 %v4428_v46, %v4427_v45  ;;  %p353_p8 = scmp.lt.s32.totalorder %s1828_s20, 31 }
  0x91   : > { %2265 = vmatpush1.bf16.msk.msra.mxu0 %vm3660_vm11, %v2263_v50  ;;  %2711 = vrot.lane.b32.xlu1 %v4408_v62, %s2891_s28  ;;  %v4429_v50 = vld [vmem:[#allocation10_spill] sm:$0xff]  ;;  %v4435_v62 = vld [vmem:[#allocation12_spill] sm:$0xff]  ;;  %s4454_s20 = smov (!%p353_p8, %s1828_s20), 31 }
  0x92   : > { %2268 = vmatprep.subr.msk.bf16.mxu0 %vm3632_vm6, %v2266_v51  ;;  %2706 = vrot.lane.b32.xlu0 %v4411_v7, %s2891_s28  ;;  %v4430_v51 = vld [vmem:[#allocation33_spill] sm:$0xff]  ;;  %v4438_v7 = vld [vmem:[#allocation36_spill] sm:$0xff]  ;;  %s2155_s11 = sshll.u32 %s4454_s20, 4 }
  0x93   : > { %v2296_v55 = vpack.c.bf16 %v4431_v52, %v4430_v51  ;;  %v2305_v9 = vpack.c.bf16 %v4439_v8, %v4438_v7  ;;  %v899_v52 = vld [vmem:[%s3725_s9 + $0x70] sm:$0xff]  ;;  %s4226_s30 = scalar_lea.vmem %s4316_s2, %s2155_s11 }
  0x95   : > { %2271 = vmatpush1.bf16.msk.msra.mxu0 %vm3660_vm11, %v2269_v56  ;;  %2721 = vrot.lane.b32.xlu1 %v4414_v14, %s2891_s28  ;;  %v4432_v56 = vld [vmem:[#allocation11_spill] sm:$0xff] }
  0x96   : > { %2274 = vmatprep.subr.msk.bf16.mxu0 %vm3632_vm6, %v2272_v61  ;;  %2716 = vrot.lane.b32.xlu0 %v4417_v28, %s2891_s28  ;;  %v2299_v61 = vpack.c.bf16 %v4434_v60, %v4433_v57  ;;  %v4441_v14 = vld [vmem:[#allocation39_spill] sm:$0xff] }
  0x99   : > { %2277 = vmatpush1.bf16.msk.msra.mxu0 %vm3660_vm11, %v2275_v3  ;;  %2731 = vrot.lane.b32.xlu1 %v4420_v26, %s2891_s28  ;;  %v2302_v3 = vpack.c.bf16 %v4437_v2, %v4436_v1 }
  0x9a   : > { %2280 = vmatprep.subr.msk.bf16.mxu0 %vm3632_vm6, %v2278_v12  ;;  %2726 = vrot.lane.b32.xlu0 %v4423_v34, %s2891_s28  ;;  %v4440_v12 = vld [vmem:[#allocation41_spill] sm:$0xff] }
  0x9b   : > { %v2308_v16 = vpack.c.bf16 %v4441_v14, %v4440_v12 }
  0x9d   : > { %2283 = vmatpush1.bf16.msk.msra.mxu0 %vm3660_vm11, %v2281_v22  ;;  %2741 = vrot.lane.b32.xlu1 %v4426_v43, %s2891_s28 }
  0x9e   : > { %2286 = vmatprep.subr.msk.bf16.mxu0 %vm3632_vm6, %v2284_v23  ;;  %2736 = vrot.lane.b32.xlu0 %v4429_v50, %s2891_s28 }
  0xa1   : > { %2289 = vmatpush1.bf16.msk.msra.mxu0 %vm3660_vm11, %v2287_v32  ;;  %2751 = vrot.lane.b32.xlu1 %v4432_v56, %s2891_s28 }
  0xa2   : > { %2292 = vmatprep.subr.msk.bf16.mxu0 %vm3632_vm6, %v2290_v41  ;;  %2746 = vrot.lane.b32.xlu0 %v4435_v62, %s2891_s28 }
  0xa5   : > { %2295 = vmatpush1.bf16.msk.msra.mxu0 %vm3660_vm11, %v2293_v47  ;;  %2761 = vrot.lane.b32.xlu1 %v3333_v10, %s2891_s28  ;;  %v4442_v10 = vld [vmem:[#allocation40_spill] sm:$0xff] }
  0xa6   : > { %2298 = vmatprep.subr.msk.bf16.mxu0 %vm3632_vm6, %v2296_v55  ;;  %2756 = vrot.lane.b32.xlu0 %v3337_v11, %s2891_s28  ;;  %v2311_v22 = vpack.c.bf16 %v4443_v17, %v4442_v10  ;;  %v2314_v11 = vpack.c.bf16 %v3599_v59, %v3609_v21  ;;  %v890_v21 = vld [vmem:[%s3725_s9 + $0x28] sm:$0xff]  ;;  %v895_v59 = vld [vmem:[%s3725_s9 + $0x50] sm:$0xff] }
  0xa7   : > { %v902_v55 = vld [vmem:[%s3725_s9 + $0x88] sm:$0xff] }
  0xa9   : > { %2301 = vmatpush1.bf16.msk.msra.mxu0 %vm3660_vm11, %v2299_v61  ;;  %2771 = vrot.lane.b32.xlu1 %v3356_v15, %s2891_s28  ;;  %v4444_v15 = vld [vmem:[#allocation42_spill] sm:$0xff] }
  0xaa   : > { %2304 = vmatprep.subr.msk.bf16.mxu0 %vm3632_vm6, %v2302_v3  ;;  %2766 = vrot.lane.b32.xlu0 %v3375_v19, %s2891_s28  ;;  %v2317_v28 = vpack.c.bf16 %v4444_v15, %v3604_v49  ;;  %v885_v19 = vld [vmem:[%s3725_s9] sm:$0xff]  ;;  %v887_v49 = vld [vmem:[%s3725_s9 + $0x10] sm:$0xff] }
  0xad   : > { %2307 = vmatpush1.bf16.msk.msra.mxu0 %vm3660_vm11, %v2305_v9  ;;  %2781 = vrot.lane.b32.xlu1 %v3379_v20, %s2891_s28  ;;  %v888_v20 = vld [vmem:[%s3725_s9 + $0x18] sm:$0xff] }
  0xae   : > { %2310 = vmatprep.subr.msk.bf16.mxu0 %vm3632_vm6, %v2308_v16  ;;  %2776 = vrot.lane.b32.xlu0 %v3400_v24, %s2891_s28  ;;  %v889_v24 = vld [vmem:[%s3725_s9 + $0x20] sm:$0xff]  ;;  %v904_v9 = vld [vmem:[%s3725_s9 + $0x98] sm:$0xff] }
  0xb1   : > { %2313 = vmatpush1.bf16.msk.msra.mxu0 %vm3660_vm11, %v2311_v22  ;;  %2791 = vrot.lane.b32.xlu1 %v3422_v30, %s2891_s28  ;;  %v892_v30 = vld [vmem:[%s3725_s9 + $0x38] sm:$0xff] }
  0xb2   : > { %2316 = vmatprep.subr.msk.bf16.mxu0 %vm3632_vm6, %v2314_v11  ;;  %2786 = vrot.lane.b32.xlu0 %v3426_v31, %s2891_s28  ;;  %v893_v31 = vld [vmem:[%s3725_s9 + $0x40] sm:$0xff] }
  0xb5   : > { %2319 = vmatpush1.bf16.msk.msra.mxu0 %vm3660_vm11, %v2317_v28  ;;  %2801 = vrot.lane.b32.xlu1 %v3445_v54, %s2891_s28  ;;  %v891_v54 = vld [vmem:[%s3725_s9 + $0x30] sm:$0xff] }
  0xb6   : > { %2796 = vrot.lane.b32.xlu0 %v3465_v27, %s2891_s28  ;;  %v894_v27 = vld [vmem:[%s3725_s9 + $0x48] sm:$0xff] }
  0xb8   : > { %1401 = vmatmul.mubr.f32.vlgmr.msra.gmra.mrb[0].mxu0 %v885_v19  ;;  %v903_v19 = vld [vmem:[%s3725_s9 + $0x90] sm:$0xff] }
  0xb9   : > { %1406 = vmatprep.mubr.f32.mxu0 %v888_v20  ;;  %2811 = vrot.lane.b32.xlu1 %v3469_v6, %s2891_s28 }
  0xba   : > { %2806 = vrot.lane.b32.xlu0 %v3490_v5, %s2891_s28  ;;  %v896_v5 = vld [vmem:[%s3725_s9 + $0x58] sm:$0xff] }
  0xbc   : > { %1407 = vmatmul.mubr.f32.gmra.mrb[2].mxu0 %v887_v49  ;;  %v906_v49 = vld [vmem:[%s3725_s9 + $0xa8] sm:$0xff] }
  0xbd   : > { %1412 = vmatprep.mubr.f32.mxu0 %v890_v21  ;;  %2821 = vrot.lane.b32.xlu1 %v3511_v53, %s2891_s28 }
  0xbe   : > { %2816 = vrot.lane.b32.xlu0 %v3515_v63, %s2891_s28  ;;  %v898_v63 = vld [vmem:[%s3725_s9 + $0x68] sm:$0xff] }
  0xc0   : > { %1413 = vmatmul.mubr.f32.gmra.mrb[4].mxu0 %v889_v24 }
  0xc1   : > { %1418 = vmatprep.mubr.f32.mxu0 %v892_v30  ;;  %2831 = vrot.lane.b32.xlu1 %v3534_v40, %s2891_s28 }
  0xc2   : > { %2826 = vrot.lane.b32.xlu0 %v3553_v25, %s2891_s28 }
  0xc3   : > { %v2557_v6 = vpop.permute.xlu1 %2556 }
  0xc4   : > { %1419 = vmatmul.mubr.f32.gmra.mrb[6].mxu0 %v891_v54  ;;  %v2547_v53 = vpop.permute.xlu0 %2546  ;;  %v2559_v18 = vunpack.i.h.bf16 %v2557_v6  ;;  %v2558_v35 = vunpack.i.l.bf16 %v2557_v6 }
  0xc5   : > { %1424 = vmatprep.mubr.f32.mxu0 %v894_v27  ;;  %2841 = vrot.lane.b32.xlu1 %v3557_v58, %s2891_s28  ;;  %v2549_v40 = vunpack.i.h.bf16 %v2547_v53  ;;  %v2548_v39 = vunpack.i.l.bf16 %v2547_v53 }
  0xc6   : > { %2836 = vrot.lane.b32.xlu0 %v3578_v44, %s2891_s28  ;;  %v897_v44 = vld [vmem:[%s3725_s9 + $0x60] sm:$0xff]  ;;  %v1081_v46 = vsel %vm1078_vm12, %v2558_v35, %v2559_v18 }
  0xc7   : > { %v2562_v48 = vpop.permute.xlu1 %2561  ;;  %v1079_v34 = vsel %vm1078_vm12, %v2548_v39, %v2549_v40 }
  0xc8   : > { %1425 = vmatmul.mubr.f32.gmra.mrb[8].mxu0 %v893_v31  ;;  %v2552_v25 = vpop.permute.xlu0 %2551  ;;  %v2564_v23 = vunpack.i.h.bf16 %v2562_v48  ;;  %v2563_v26 = vunpack.i.l.bf16 %v2562_v48 }
  0xc9   : > { %1430 = vmatprep.mubr.f32.mxu0 %v896_v5  ;;  %v2554_v4 = vunpack.i.h.bf16 %v2552_v25  ;;  %v2553_v58 = vunpack.i.l.bf16 %v2552_v25  ;;  %2851 = vrot.lane.b32.xlu1 %v3585_v0, %s2891_s28  ;;  %v900_v0 = vld [vmem:[%s3725_s9 + $0x78] sm:$0xff] }
  0xca   : > { %2846 = vrot.lane.b32.xlu0 %v3589_v37, %s2891_s28  ;;  %v2164_v47 = vpack.c.bf16 %v2564_v23, %v2559_v18  ;;  %v1082_v37 = vsel %vm1078_vm12, %v2563_v26, %v2564_v23 }
  0xcb   : > { %v2572_v33 = vpop.permute.xlu1 %2571  ;;  %v2160_v32 = vpack.c.bf16 %v2554_v4, %v2549_v40  ;;  %v1080_v36 = vsel %vm1078_vm12, %v2553_v58, %v2554_v4  ;;  %v2166_v2 = vpack.c.bf16 %v1082_v37, %v1081_v46  ;;  %v908_v40 = vld [vmem:[%s3725_s9 + $0xb8] sm:$0xff] }
  0xcc   : > { %1431 = vmatmul.mubr.f32.gmra.mrb[10].mxu0 %v895_v59  ;;  %v2574_v38 = vunpack.i.h.bf16 %v2572_v33  ;;  %v2573_v41 = vunpack.i.l.bf16 %v2572_v33  ;;  %v2567_v43 = vpop.permute.xlu0 %2566  ;;  %v2162_v45 = vpack.c.bf16 %v1080_v36, %v1079_v34  ;;  %v905_v59 = vld [vmem:[%s3725_s9 + $0xa0] sm:$0xff]  ;;  %v912_v37 = vld [vmem:[%s3725_s9 + $0xd8] sm:$0xff] }
  0xcd   : > { %1436 = vmatprep.mubr.f32.mxu0 %v898_v63  ;;  %v2569_v50 = vunpack.i.h.bf16 %v2567_v43  ;;  %v2568_v51 = vunpack.i.l.bf16 %v2567_v43  ;;  %2161 = vmatprep.subr.bf16.mxu1 %v2160_v32  ;;  %v910_v32 = vld [vmem:[%s3725_s9 + $0xc8] sm:$0xff] }
  0xce   : > { %2861 = vrot.lane.b32.xlu1 %v3619_v29, %s2891_s28  ;;  %2856 = vrot.lane.b32.xlu0 %v3627_v13, %s2891_s28  ;;  %v1084_v61 = vsel %vm1078_vm12, %v2573_v41, %v2574_v38  ;;  %v901_v13 = vld [vmem:[%s3725_s9 + $0x80] sm:$0xff] }
  0xcf   : > { %2163 = vmatpush1.bf16.msra.mxu1 %v2162_v45  ;;  %v2168_v56 = vpack.c.bf16 %v2574_v38, %v2569_v50  ;;  %v2582_v57 = vpop.permute.xlu1 %2581  ;;  %v1083_v60 = vsel %vm1078_vm12, %v2568_v51, %v2569_v50  ;;  %v909_v50 = vld [vmem:[%s3725_s9 + $0xc0] sm:$0xff] }
  0xd0   : > { %1437 = vmatmul.mubr.f32.gmra.mrb[12].mxu0 %v897_v44  ;;  %2165 = vmatprep.subr.bf16.mxu1 %v2164_v47  ;;  %v2584_v62 = vunpack.i.h.bf16 %v2582_v57  ;;  %v2583_v29 = vunpack.i.l.bf16 %v2582_v57  ;;  %v2577_v1 = vpop.permute.xlu0 %2576  ;;  %v2170_v8 = vpack.c.bf16 %v1084_v61, %v1083_v60  ;;  %v907_v44 = vld [vmem:[%s3725_s9 + $0xb0] sm:$0xff] }
  0xd1   : > { %1442 = vmatprep.mubr.f32.mxu0 %v900_v0  ;;  %v2579_v3 = vunpack.i.h.bf16 %v2577_v1  ;;  %v2578_v7 = vunpack.i.l.bf16 %v2577_v1 }
  0xd2   : > { %v1086_v10 = vsel %vm1078_vm12, %v2583_v29, %v2584_v62 }
  0xd3   : > { %2167 = vmatpush1.bf16.msra.mxu1 %v2166_v2  ;;  %v2172_v12 = vpack.c.bf16 %v2584_v62, %v2579_v3  ;;  %v2592_v14 = vpop.permute.xlu1 %2591  ;;  %v1085_v16 = vsel %vm1078_vm12, %v2578_v7, %v2579_v3  ;;  %v911_v2 = vld [vmem:[%s3725_s9 + $0xd0] sm:$0xff]  ;;  %v914_v7 = vld [vmem:[%s3725_s9 + $0xe8] sm:$0xff] }
  0xd4   : > { %1443 = vmatmul.mubr.f32.gmra.mrb[14].mxu0 %v899_v52  ;;  %2169 = vmatprep.subr.bf16.mxu1 %v2168_v56  ;;  %v2594_v17 = vunpack.i.h.bf16 %v2592_v14  ;;  %v2593_v22 = vunpack.i.l.bf16 %v2592_v14  ;;  %v2587_v11 = vpop.permute.xlu0 %2586  ;;  %v2174_v20 = vpack.c.bf16 %v1086_v10, %v1085_v16 }
  0xd5   : > { %1448 = vmatprep.mubr.f32.mxu0 %v902_v55  ;;  %v2589_v15 = vunpack.i.h.bf16 %v2587_v11  ;;  %v2588_v28 = vunpack.i.l.bf16 %v2587_v11  ;;  %v913_v11 = vld [vmem:[%s3725_s9 + $0xe0] sm:$0xff] }
  0xd6   : > { %v1088_v54 = vsel %vm1078_vm12, %v2593_v22, %v2594_v17 }
  0xd7   : > { %2171 = vmatpush1.bf16.msra.mxu1 %v2170_v8  ;;  %v2176_v21 = vpack.c.bf16 %v2594_v17, %v2589_v15  ;;  %v2602_v24 = vpop.permute.xlu1 %2601  ;;  %v1087_v30 = vsel %vm1078_vm12, %v2588_v28, %v2589_v15  ;;  %v916_v28 = vld [vmem:[%s3725_s9 + $0xf8] sm:$0xff] }
  0xd8   : > { %1449 = vmatmul.mubr.f32.gmra.mrb[16].mxu0 %v901_v13  ;;  %2173 = vmatprep.subr.bf16.mxu1 %v2172_v12  ;;  %v2604_v27 = vunpack.i.h.bf16 %v2602_v24  ;;  %v2603_v31 = vunpack.i.l.bf16 %v2602_v24  ;;  %v2597_v5 = vpop.permute.xlu0 %2596  ;;  %v2178_v63 = vpack.c.bf16 %v1088_v54, %v1087_v30 }
  0xd9   : > { %1454 = vmatprep.mubr.f32.mxu0 %v904_v9  ;;  %v2599_v6 = vunpack.i.h.bf16 %v2597_v5  ;;  %v2598_v53 = vunpack.i.l.bf16 %v2597_v5  ;;  %v915_v5 = vld [vmem:[%s3725_s9 + $0xf0] sm:$0xff] }
  0xda   : > { %v1090_v35 = vsel %vm1078_vm12, %v2603_v31, %v2604_v27 }
  0xdb   : > { %2175 = vmatpush1.bf16.msra.mxu1 %v2174_v20  ;;  %v2180_v39 = vpack.c.bf16 %v2604_v27, %v2599_v6  ;;  %v2612_v48 = vpop.permute.xlu1 %2611  ;;  %v1089_v18 = vsel %vm1078_vm12, %v2598_v53, %v2599_v6  ;;  %v1992_v53 = vld [vmem:[%s3725_s9 + $0x208] sm:$0xff] }
  0xdc   : > { %1455 = vmatmul.mubr.f32.gmra.mrb[18].mxu0 %v903_v19  ;;  %2177 = vmatprep.subr.bf16.mxu1 %v2176_v21  ;;  %v2614_v25 = vunpack.i.h.bf16 %v2612_v48  ;;  %v2613_v23 = vunpack.i.l.bf16 %v2612_v48  ;;  %v2607_v26 = vpop.permute.xlu0 %2606  ;;  %v2182_v33 = vpack.c.bf16 %v1090_v35, %v1089_v18 }
  0xdd   : > { %1460 = vmatprep.mubr.f32.mxu0 %v906_v49  ;;  %v2609_v4 = vunpack.i.h.bf16 %v2607_v26  ;;  %v2608_v58 = vunpack.i.l.bf16 %v2607_v26 }
  0xde   : > { %v1092_v41 = vsel %vm1078_vm12, %v2613_v23, %v2614_v25 }
  0xdf   : > { %2179 = vmatpush1.bf16.msra.mxu1 %v2178_v63  ;;  %v2184_v34 = vpack.c.bf16 %v2614_v25, %v2609_v4  ;;  %v2622_v36 = vpop.permute.xlu1 %2621  ;;  %v1091_v38 = vsel %vm1078_vm12, %v2608_v58, %v2609_v4 }
  0xe0   : > { %1461 = vmatmul.mubr.f32.gmra.mrb[20].mxu0 %v905_v59  ;;  %2181 = vmatprep.subr.bf16.mxu1 %v2180_v39  ;;  %v2624_v43 = vunpack.i.h.bf16 %v2622_v36  ;;  %v2623_v45 = vunpack.i.l.bf16 %v2622_v36  ;;  %v2617_v46 = vpop.permute.xlu0 %2616  ;;  %v2186_v51 = vpack.c.bf16 %v1092_v41, %v1091_v38 }
  0xe1   : > { %1466 = vmatprep.mubr.f32.mxu0 %v908_v40  ;;  %v2619_v0 = vunpack.i.h.bf16 %v2617_v46  ;;  %v2618_v47 = vunpack.i.l.bf16 %v2617_v46 }
  0xe2   : > { %v1094_v57 = vsel %vm1078_vm12, %v2623_v45, %v2624_v43 }
  0xe3   : > { %2183 = vmatpush1.bf16.msra.mxu1 %v2182_v33  ;;  %v2188_v52 = vpack.c.bf16 %v2624_v43, %v2619_v0  ;;  %v2632_v55 = vpop.permute.xlu1 %2631  ;;  %v1093_v56 = vsel %vm1078_vm12, %v2618_v47, %v2619_v0 }
  0xe4   : > { %1467 = vmatmul.mubr.f32.gmra.mrb[22].mxu0 %v907_v44  ;;  %2185 = vmatprep.subr.bf16.mxu1 %v2184_v34  ;;  %v2634_v60 = vunpack.i.h.bf16 %v2632_v55  ;;  %v2633_v61 = vunpack.i.l.bf16 %v2632_v55  ;;  %v2627_v62 = vpop.permute.xlu0 %2626  ;;  %v2190_v3 = vpack.c.bf16 %v1094_v57, %v1093_v56 }
  0xe5   : > { %1472 = vmatprep.mubr.f32.mxu0 %v910_v32  ;;  %v2629_v29 = vunpack.i.h.bf16 %v2627_v62  ;;  %v2628_v1 = vunpack.i.l.bf16 %v2627_v62 }
  0xe6   : > { %v1096_v12 = vsel %vm1078_vm12, %v2633_v61, %v2634_v60 }
  0xe7   : > { %2187 = vmatpush1.bf16.msra.mxu1 %v2186_v51  ;;  %v2192_v13 = vpack.c.bf16 %v2634_v60, %v2629_v29  ;;  %v2642_v8 = vpop.permute.xlu1 %2641  ;;  %v1095_v9 = vsel %vm1078_vm12, %v2628_v1, %v2629_v29 }
  0xe8   : > { %1473 = vmatmul.mubr.f32.gmra.mrb[24].mxu0 %v909_v50  ;;  %2189 = vmatprep.subr.bf16.mxu1 %v2188_v52  ;;  %v2644_v14 = vunpack.i.h.bf16 %v2642_v8  ;;  %v2643_v16 = vunpack.i.l.bf16 %v2642_v8  ;;  %v2637_v10 = vpop.permute.xlu0 %2636  ;;  %v2194_v15 = vpack.c.bf16 %v1096_v12, %v1095_v9 }
  0xe9   : > { %1478 = vmatprep.mubr.f32.mxu0 %v912_v37  ;;  %v2639_v17 = vunpack.i.h.bf16 %v2637_v10  ;;  %v2638_v22 = vunpack.i.l.bf16 %v2637_v10 }
  0xea   : > { %v1098_v21 = vsel %vm1078_vm12, %v2643_v16, %v2644_v14 }
  0xeb   : > { %2191 = vmatpush1.bf16.msra.mxu1 %v2190_v3  ;;  %v2196_v19 = vpack.c.bf16 %v2644_v14, %v2639_v17  ;;  %v2652_v20 = vpop.permute.xlu1 %2651  ;;  %v1097_v49 = vsel %vm1078_vm12, %v2638_v22, %v2639_v17 }
  0xec   : > { %1479 = vmatmul.mubr.f32.gmra.mrb[26].mxu0 %v911_v2  ;;  %2193 = vmatprep.subr.bf16.mxu1 %v2192_v13  ;;  %v2654_v24 = vunpack.i.h.bf16 %v2652_v20  ;;  %v2653_v30 = vunpack.i.l.bf16 %v2652_v20  ;;  %v2647_v54 = vpop.permute.xlu0 %2646  ;;  %v2198_v6 = vpack.c.bf16 %v1098_v21, %v1097_v49 }
  0xed   : > { %1484 = vmatprep.mubr.f32.mxu0 %v914_v7  ;;  %v2649_v27 = vunpack.i.h.bf16 %v2647_v54  ;;  %v2648_v31 = vunpack.i.l.bf16 %v2647_v54 }
  0xee   : > { %v1100_v39 = vsel %vm1078_vm12, %v2653_v30, %v2654_v24 }
  0xef   : > { %2195 = vmatpush1.bf16.msra.mxu1 %v2194_v15  ;;  %v2200_v59 = vpack.c.bf16 %v2654_v24, %v2649_v27  ;;  %v2662_v63 = vpop.permute.xlu1 %2661  ;;  %v1099_v40 = vsel %vm1078_vm12, %v2648_v31, %v2649_v27  ;;  %v4445_v15 = vld [vmem:[#allocation43_spill] sm:$0xff] }
  0xf0   : > { %1485 = vmatmul.mubr.f32.gmra.mrb[28].mxu0 %v913_v11  ;;  %2197 = vmatprep.subr.bf16.mxu1 %v2196_v19  ;;  %v2664_v48 = vunpack.i.h.bf16 %v2662_v63  ;;  %v2663_v18 = vunpack.i.l.bf16 %v2662_v63  ;;  %v2657_v35 = vpop.permute.xlu0 %2656  ;;  %v2202_v26 = vpack.c.bf16 %v1100_v39, %v1099_v40  ;;  %vm2158_vm13 = vcmp.ne.s32.totalorder %v4445_v15, 13 }
  0xf1   : > { %1490 = vmatprep.mubr.f32.mxu0 %v916_v28  ;;  %v2659_v25 = vunpack.i.h.bf16 %v2657_v35  ;;  %v2658_v23 = vunpack.i.l.bf16 %v2657_v35  ;;  %vm3947_vm0 = vmpackc.low %vm2158_vm13, %vm2158_vm13 }
  0xf2   : > { %v1102_v33 = vsel %vm1078_vm12, %v2663_v18, %v2664_v48 }
  0xf3   : > { %2199 = vmatpush1.bf16.msra.mxu1 %v2198_v6  ;;  %v2204_v4 = vpack.c.bf16 %v2664_v48, %v2659_v25  ;;  %v2672_v58 = vpop.permute.xlu1 %2671  ;;  %v1101_v44 = vsel %vm1078_vm12, %v2658_v23, %v2659_v25 }
  0xf4   : > { %1491 = vmatmul.mubr.f32.gmra.mrb[30].mxu0 %v915_v5  ;;  %2201 = vmatprep.subr.bf16.mxu1 %v2200_v59  ;;  %v2674_v32 = vunpack.i.h.bf16 %v2672_v58  ;;  %v2673_v34 = vunpack.i.l.bf16 %v2672_v58  ;;  %v2667_v36 = vpop.permute.xlu0 %2666  ;;  %v2206_v43 = vpack.c.bf16 %v1102_v33, %v1101_v44  ;;  %v2010_v5 = vld [vmem:[%s3725_s9 + $0x298] sm:$0xff] }
  0xf5   : > { %1594 = vmatprep.mubr.f32.mxu0 %v1992_v53  ;;  %v2669_v38 = vunpack.i.h.bf16 %v2667_v36  ;;  %v2668_v41 = vunpack.i.l.bf16 %v2667_v36  ;;  %v1998_v59 = vld [vmem:[%s3725_s9 + $0x238] sm:$0xff] }
  0xf6   : > { %v1104_v47 = vsel %vm1078_vm12, %v2673_v34, %v2674_v32 }
  0xf7   : > { %2203 = vmatpush1.bf16.msra.mxu1 %v2202_v26  ;;  %v2208_v45 = vpack.c.bf16 %v2674_v32, %v2669_v38  ;;  %v2682_v46 = vpop.permute.xlu1 %2681  ;;  %v1103_v0 = vsel %vm1078_vm12, %v2668_v41, %v2669_v38  ;;  %v1834_v41 = vld [vmem:[%s3725_s9 + $0x118] sm:$0xff] }
  0xf8   : > { %2205 = vmatprep.subr.bf16.mxu1 %v2204_v4  ;;  %v2684_v50 = vunpack.i.h.bf16 %v2682_v46  ;;  %v2683_v51 = vunpack.i.l.bf16 %v2682_v46  ;;  %v2677_v37 = vpop.permute.xlu0 %2676  ;;  %v2210_v56 = vpack.c.bf16 %v1104_v47, %v1103_v0  ;;  %v1831_v4 = vld [vmem:[%s3725_s9 + $0x100] sm:$0xff]  ;;  %v1833_v0 = vld [vmem:[%s3725_s9 + $0x110] sm:$0xff] }
  0xf9   : > { %v2679_v52 = vunpack.i.h.bf16 %v2677_v37  ;;  %v2678_v55 = vunpack.i.l.bf16 %v2677_v37 }
  0xfa   : > { %v1106_v62 = vsel %vm1078_vm12, %v2683_v51, %v2684_v50 }
  0xfb   : > { %2207 = vmatpush1.bf16.msra.mxu1 %v2206_v43  ;;  %v2212_v57 = vpack.c.bf16 %v2684_v50, %v2679_v52  ;;  %v2692_v60 = vpop.permute.xlu1 %2691  ;;  %v1105_v61 = vsel %vm1078_vm12, %v2678_v55, %v2679_v52 }
  0xfc   : > { %2209 = vmatprep.subr.bf16.mxu1 %v2208_v45  ;;  %v2694_v29 = vunpack.i.h.bf16 %v2692_v60  ;;  %v2693_v1 = vunpack.i.l.bf16 %v2692_v60  ;;  %v2687_v2 = vpop.permute.xlu0 %2686  ;;  %v2214_v13 = vpack.c.bf16 %v1106_v62, %v1105_v61 }
  0xfd   : > { %v2689_v3 = vunpack.i.h.bf16 %v2687_v2  ;;  %v2688_v7 = vunpack.i.l.bf16 %v2687_v2 }
  0xfe   : > { %v1108_v14 = vsel %vm1078_vm12, %v2693_v1, %v2694_v29 }
  0xff   : > { %2211 = vmatpush1.bf16.msra.mxu1 %v2210_v56  ;;  %v2216_v8 = vpack.c.bf16 %v2694_v29, %v2689_v3  ;;  %v2702_v9 = vpop.permute.xlu1 %2701  ;;  %v1107_v12 = vsel %vm1078_vm12, %v2688_v7, %v2689_v3  ;;  %v1835_v29 = vld [vmem:[%s3725_s9 + $0x120] sm:$0xff] }
 0x100   : > { %2213 = vmatprep.subr.bf16.mxu1 %v2212_v57  ;;  %v2704_v16 = vunpack.i.h.bf16 %v2702_v9  ;;  %v2703_v10 = vunpack.i.l.bf16 %v2702_v9  ;;  %v2697_v17 = vpop.permute.xlu0 %2696  ;;  %v2218_v28 = vpack.c.bf16 %v1108_v14, %v1107_v12  ;;  %v1836_v57 = vld [vmem:[%s3725_s9 + $0x128] sm:$0xff]  ;;  %v1838_v12 = vld [vmem:[%s3725_s9 + $0x138] sm:$0xff] }
 0x101   : > { %v2699_v22 = vunpack.i.h.bf16 %v2697_v17  ;;  %v2698_v11 = vunpack.i.l.bf16 %v2697_v17  ;;  %v1837_v17 = vld [vmem:[%s3725_s9 + $0x130] sm:$0xff] }
 0x102   : > { %v1110_v21 = vsel %vm1078_vm12, %v2703_v10, %v2704_v16 }
 0x103   : > { %2215 = vmatpush1.bf16.msra.mxu1 %v2214_v13  ;;  %v2220_v19 = vpack.c.bf16 %v2704_v16, %v2699_v22  ;;  %v2712_v20 = vpop.permute.xlu1 %2711  ;;  %v1109_v49 = vsel %vm1078_vm12, %v2698_v11, %v2699_v22 }
 0x104   : > { %2217 = vmatprep.subr.bf16.mxu1 %v2216_v8  ;;  %v2714_v24 = vunpack.i.h.bf16 %v2712_v20  ;;  %v2713_v30 = vunpack.i.l.bf16 %v2712_v20  ;;  %v2707_v54 = vpop.permute.xlu0 %2706  ;;  %v2222_v53 = vpack.c.bf16 %v1110_v21, %v1109_v49  ;;  %v1840_v21 = vld [vmem:[%s3725_s9 + $0x148] sm:$0xff] }
 0x105   : > { %v2709_v27 = vunpack.i.h.bf16 %v2707_v54  ;;  %v2708_v31 = vunpack.i.l.bf16 %v2707_v54 }
 0x106   : > { %v726_v6 = vsel %vm724_vm14, %v2713_v30, %v2714_v24 }
 0x107   : > { %2219 = vmatpush1.bf16.msra.mxu1 %v2218_v28  ;;  %v2320_v63 = vpack.c.bf16 %v2714_v24, %v2709_v27  ;;  %v725_v42 = vsel %vm724_vm14, %v2708_v31, %v2709_v27  ;;  %v2722_v40 = vpop.permute.xlu1 %2721  ;;  %v1839_v27 = vld [vmem:[%s3725_s9 + $0x140] sm:$0xff] }
 0x108   : > { %2221 = vmatprep.subr.bf16.mxu1 %v2220_v19  ;;  %v2323_v39 = vpack.c.bf16 %v726_v6, %v725_v42  ;;  %v2724_v48 = vunpack.i.h.bf16 %v2722_v40  ;;  %v2723_v18 = vunpack.i.l.bf16 %v2722_v40  ;;  %v2717_v35 = vpop.permute.xlu0 %2716 }
 0x109   : > { %v2719_v25 = vunpack.i.h.bf16 %v2717_v35  ;;  %v2718_v23 = vunpack.i.l.bf16 %v2717_v35  ;;  %2322 = vmatprep.subr.msk.bf16.mxu0 %vm3947_vm0, %v2320_v63 }
 0x10a   : > { %v728_v26 = vsel %vm724_vm14, %v2723_v18, %v2724_v48  ;;  %2325 = vmatpush1.bf16.msk.msra.mxu0 %vm3952_vm1, %v2323_v39 }
 0x10b   : > { %2223 = vmatpush1.bf16.msra.mxu1 %v2222_v53  ;;  %v2326_v58 = vpack.c.bf16 %v2724_v48, %v2719_v25  ;;  %v727_v44 = vsel %vm724_vm14, %v2718_v23, %v2719_v25  ;;  %v2732_v33 = vpop.permute.xlu1 %2731  ;;  %v1842_v48 = vld [vmem:[%s3725_s9 + $0x158] sm:$0xff]  ;;  %v1841_v23 = vld [vmem:[%s3725_s9 + $0x150] sm:$0xff] }
 0x10c   : > { %2416 = vmatprep.subr.msk.bf16.mxu1 %vm3947_vm0, %v2320_v63  ;;  %v2329_v32 = vpack.c.bf16 %v728_v26, %v727_v44  ;;  %v2734_v34 = vunpack.i.h.bf16 %v2732_v33  ;;  %v2733_v36 = vunpack.i.l.bf16 %v2732_v33  ;;  %v2727_v38 = vpop.permute.xlu0 %2726 }
 0x10d   : > { %v2729_v43 = vunpack.i.h.bf16 %v2727_v38  ;;  %v2728_v45 = vunpack.i.l.bf16 %v2727_v38  ;;  %2328 = vmatprep.subr.msk.bf16.mxu0 %vm3947_vm0, %v2326_v58 }
 0x10e   : > { %1240 = vmatmul.mubr.f32.vlgmr.msra.gmra.mrb[0].mxu1 %v1831_v4  ;;  %v730_v46 = vsel %vm724_vm14, %v2733_v36, %v2734_v34  ;;  %2331 = vmatpush1.bf16.msk.msra.mxu0 %vm3952_vm1, %v2329_v32  ;;  %v1844_v36 = vld [vmem:[%s3725_s9 + $0x168] sm:$0xff] }
 0x10f   : > { %2432 = vmatpush1.bf16.msk.msra.mxu1 %vm3952_vm1, %v2323_v39  ;;  %v2332_v47 = vpack.c.bf16 %v2734_v34, %v2729_v43  ;;  %v729_v50 = vsel %vm724_vm14, %v2728_v45, %v2729_v43  ;;  %v2742_v51 = vpop.permute.xlu1 %2741  ;;  %1245 = vmatprep.mubr.f32.mxu1 %v1834_v41  ;;  %v1843_v45 = vld [vmem:[%s3725_s9 + $0x160] sm:$0xff] }
 0x110   : > { %2417 = vmatprep.subr.msk.bf16.mxu1 %vm3947_vm0, %v2326_v58  ;;  %v2335_v37 = vpack.c.bf16 %v730_v46, %v729_v50  ;;  %v2744_v52 = vunpack.i.h.bf16 %v2742_v51  ;;  %v2743_v55 = vunpack.i.l.bf16 %v2742_v51  ;;  %v2737_v56 = vpop.permute.xlu0 %2736 }
 0x111   : > { %v2739_v60 = vunpack.i.h.bf16 %v2737_v56  ;;  %v2738_v61 = vunpack.i.l.bf16 %v2737_v56  ;;  %2334 = vmatprep.subr.msk.bf16.mxu0 %vm3947_vm0, %v2332_v47 }
 0x112   : > { %1246 = vmatmul.mubr.f32.gmra.mrb[2].mxu1 %v1833_v0  ;;  %v732_v62 = vsel %vm724_vm14, %v2743_v55, %v2744_v52  ;;  %2337 = vmatpush1.bf16.msk.msra.mxu0 %vm3952_vm1, %v2335_v37  ;;  %v1846_v55 = vld [vmem:[%s3725_s9 + $0x178] sm:$0xff] }
 0x113   : > { %2433 = vmatpush1.bf16.msk.msra.mxu1 %vm3952_vm1, %v2329_v32  ;;  %v2338_v1 = vpack.c.bf16 %v2744_v52, %v2739_v60  ;;  %v731_v2 = vsel %vm724_vm14, %v2738_v61, %v2739_v60  ;;  %v2752_v3 = vpop.permute.xlu1 %2751  ;;  %1251 = vmatprep.mubr.f32.mxu1 %v1836_v57  ;;  %v1845_v61 = vld [vmem:[%s3725_s9 + $0x170] sm:$0xff] }
 0x114   : > { %2418 = vmatprep.subr.msk.bf16.mxu1 %vm3947_vm0, %v2332_v47  ;;  %v2341_v7 = vpack.c.bf16 %v732_v62, %v731_v2  ;;  %v2754_v13 = vunpack.i.h.bf16 %v2752_v3  ;;  %v2753_v8 = vunpack.i.l.bf16 %v2752_v3  ;;  %v2747_v9 = vpop.permute.xlu0 %2746 }
 0x115   : > { %v2749_v14 = vunpack.i.h.bf16 %v2747_v9  ;;  %v2748_v16 = vunpack.i.l.bf16 %v2747_v9  ;;  %2340 = vmatprep.subr.msk.bf16.mxu0 %vm3947_vm0, %v2338_v1 }
 0x116   : > { %1252 = vmatmul.mubr.f32.gmra.mrb[4].mxu1 %v1835_v29  ;;  %v734_v10 = vsel %vm724_vm14, %v2753_v8, %v2754_v13  ;;  %2343 = vmatpush1.bf16.msk.msra.mxu0 %vm3952_vm1, %v2341_v7  ;;  %v1848_v8 = vld [vmem:[%s3725_s9 + $0x188] sm:$0xff] }
 0x117   : > { %2434 = vmatpush1.bf16.msk.msra.mxu1 %vm3952_vm1, %v2335_v37  ;;  %v2344_v22 = vpack.c.bf16 %v2754_v13, %v2749_v14  ;;  %v733_v11 = vsel %vm724_vm14, %v2748_v16, %v2749_v14  ;;  %v2762_v15 = vpop.permute.xlu1 %2761  ;;  %1257 = vmatprep.mubr.f32.mxu1 %v1838_v12  ;;  %v1847_v16 = vld [vmem:[%s3725_s9 + $0x180] sm:$0xff] }
 0x118   : > { %2419 = vmatprep.subr.msk.bf16.mxu1 %vm3947_vm0, %v2338_v1  ;;  %v2347_v28 = vpack.c.bf16 %v734_v10, %v733_v11  ;;  %v2764_v19 = vunpack.i.h.bf16 %v2762_v15  ;;  %v2763_v20 = vunpack.i.l.bf16 %v2762_v15  ;;  %v2757_v49 = vpop.permute.xlu0 %2756 }
 0x119   : > { %v2759_v24 = vunpack.i.h.bf16 %v2757_v49  ;;  %v2758_v30 = vunpack.i.l.bf16 %v2757_v49  ;;  %2346 = vmatprep.subr.msk.bf16.mxu0 %vm3947_vm0, %v2344_v22 }
 0x11a   : > { %1258 = vmatmul.mubr.f32.gmra.mrb[6].mxu1 %v1837_v17  ;;  %v736_v54 = vsel %vm724_vm14, %v2763_v20, %v2764_v19  ;;  %2349 = vmatpush1.bf16.msk.msra.mxu0 %vm3952_vm1, %v2347_v28  ;;  %v1850_v20 = vld [vmem:[%s3725_s9 + $0x198] sm:$0xff] }
 0x11b   : > { %2435 = vmatpush1.bf16.msk.msra.mxu1 %vm3952_vm1, %v2341_v7  ;;  %v2350_v31 = vpack.c.bf16 %v2764_v19, %v2759_v24  ;;  %v735_v6 = vsel %vm724_vm14, %v2758_v30, %v2759_v24  ;;  %v2772_v53 = vpop.permute.xlu1 %2771  ;;  %1263 = vmatprep.mubr.f32.mxu1 %v1840_v21  ;;  %v1849_v30 = vld [vmem:[%s3725_s9 + $0x190] sm:$0xff] }
 0x11c   : > { %2420 = vmatprep.subr.msk.bf16.mxu1 %vm3947_vm0, %v2344_v22  ;;  %v2353_v63 = vpack.c.bf16 %v736_v54, %v735_v6  ;;  %v2774_v42 = vunpack.i.h.bf16 %v2772_v53  ;;  %v2773_v40 = vunpack.i.l.bf16 %v2772_v53  ;;  %v2767_v39 = vpop.permute.xlu0 %2766 }
 0x11d   : > { %v2769_v18 = vunpack.i.h.bf16 %v2767_v39  ;;  %v2768_v35 = vunpack.i.l.bf16 %v2767_v39  ;;  %2352 = vmatprep.subr.msk.bf16.mxu0 %vm3947_vm0, %v2350_v31 }
 0x11e   : > { %1264 = vmatmul.mubr.f32.gmra.mrb[8].mxu1 %v1839_v27  ;;  %v738_v25 = vsel %vm724_vm14, %v2773_v40, %v2774_v42  ;;  %2355 = vmatpush1.bf16.msk.msra.mxu0 %vm3952_vm1, %v2353_v63  ;;  %v1852_v40 = vld [vmem:[%s3725_s9 + $0x1a8] sm:$0xff] }
 0x11f   : > { %2436 = vmatpush1.bf16.msk.msra.mxu1 %vm3952_vm1, %v2347_v28  ;;  %v2356_v26 = vpack.c.bf16 %v2774_v42, %v2769_v18  ;;  %v737_v4 = vsel %vm724_vm14, %v2768_v35, %v2769_v18  ;;  %v2782_v58 = vpop.permute.xlu1 %2781  ;;  %1269 = vmatprep.mubr.f32.mxu1 %v1842_v48  ;;  %v1851_v35 = vld [vmem:[%s3725_s9 + $0x1a0] sm:$0xff] }
 0x120   : > { %2421 = vmatprep.subr.msk.bf16.mxu1 %vm3947_vm0, %v2350_v31  ;;  %v2359_v44 = vpack.c.bf16 %v738_v25, %v737_v4  ;;  %v2784_v33 = vunpack.i.h.bf16 %v2782_v58  ;;  %v2783_v32 = vunpack.i.l.bf16 %v2782_v58  ;;  %v2777_v34 = vpop.permute.xlu0 %2776 }
 0x121   : > { %v2779_v38 = vunpack.i.h.bf16 %v2777_v34  ;;  %v2778_v41 = vunpack.i.l.bf16 %v2777_v34  ;;  %2358 = vmatprep.subr.msk.bf16.mxu0 %vm3947_vm0, %v2356_v26 }
 0x122   : > { %1270 = vmatmul.mubr.f32.gmra.mrb[10].mxu1 %v1841_v23  ;;  %v740_v43 = vsel %vm724_vm14, %v2783_v32, %v2784_v33  ;;  %2361 = vmatpush1.bf16.msk.msra.mxu0 %vm3952_vm1, %v2359_v44  ;;  %v1854_v32 = vld [vmem:[%s3725_s9 + $0x1b8] sm:$0xff] }
 0x123   : > { %2437 = vmatpush1.bf16.msk.msra.mxu1 %vm3952_vm1, %v2353_v63  ;;  %v2362_v46 = vpack.c.bf16 %v2784_v33, %v2779_v38  ;;  %v739_v0 = vsel %vm724_vm14, %v2778_v41, %v2779_v38  ;;  %v2792_v47 = vpop.permute.xlu1 %2791  ;;  %1275 = vmatprep.mubr.f32.mxu1 %v1844_v36  ;;  %v1853_v41 = vld [vmem:[%s3725_s9 + $0x1b0] sm:$0xff] }
 0x124   : > { %2422 = vmatprep.subr.msk.bf16.mxu1 %vm3947_vm0, %v2356_v26  ;;  %v2365_v50 = vpack.c.bf16 %v740_v43, %v739_v0  ;;  %v2794_v51 = vunpack.i.h.bf16 %v2792_v47  ;;  %v2793_v37 = vunpack.i.l.bf16 %v2792_v47  ;;  %v2787_v52 = vpop.permute.xlu0 %2786 }
 0x125   : > { %v2789_v56 = vunpack.i.h.bf16 %v2787_v52  ;;  %v2788_v57 = vunpack.i.l.bf16 %v2787_v52  ;;  %2364 = vmatprep.subr.msk.bf16.mxu0 %vm3947_vm0, %v2362_v46 }
 0x126   : > { %1276 = vmatmul.mubr.f32.gmra.mrb[12].mxu1 %v1843_v45  ;;  %v742_v60 = vsel %vm724_vm14, %v2793_v37, %v2794_v51  ;;  %2367 = vmatpush1.bf16.msk.msra.mxu0 %vm3952_vm1, %v2365_v50  ;;  %v1856_v37 = vld [vmem:[%s3725_s9 + $0x1c8] sm:$0xff] }
 0x127   : > { %2438 = vmatpush1.bf16.msk.msra.mxu1 %vm3952_vm1, %v2359_v44  ;;  %v2368_v62 = vpack.c.bf16 %v2794_v51, %v2789_v56  ;;  %v741_v29 = vsel %vm724_vm14, %v2788_v57, %v2789_v56  ;;  %v2802_v1 = vpop.permute.xlu1 %2801  ;;  %1281 = vmatprep.mubr.f32.mxu1 %v1846_v55  ;;  %v1855_v57 = vld [vmem:[%s3725_s9 + $0x1c0] sm:$0xff] }
 0x128   : > { %2423 = vmatprep.subr.msk.bf16.mxu1 %vm3947_vm0, %v2362_v46  ;;  %v2371_v2 = vpack.c.bf16 %v742_v60, %v741_v29  ;;  %v2804_v3 = vunpack.i.h.bf16 %v2802_v1  ;;  %v2803_v7 = vunpack.i.l.bf16 %v2802_v1  ;;  %v2797_v13 = vpop.permute.xlu0 %2796 }
 0x129   : > { %v2799_v9 = vunpack.i.h.bf16 %v2797_v13  ;;  %v2798_v12 = vunpack.i.l.bf16 %v2797_v13  ;;  %2370 = vmatprep.subr.msk.bf16.mxu0 %vm3947_vm0, %v2368_v62 }
 0x12a   : > { %1282 = vmatmul.mubr.f32.gmra.mrb[14].mxu1 %v1845_v61  ;;  %v744_v14 = vsel %vm724_vm14, %v2803_v7, %v2804_v3  ;;  %2373 = vmatpush1.bf16.msk.msra.mxu0 %vm3952_vm1, %v2371_v2  ;;  %v1858_v7 = vld [vmem:[%s3725_s9 + $0x1d8] sm:$0xff] }
 0x12b   : > { %2439 = vmatpush1.bf16.msk.msra.mxu1 %vm3952_vm1, %v2365_v50  ;;  %v2374_v10 = vpack.c.bf16 %v2804_v3, %v2799_v9  ;;  %v743_v17 = vsel %vm724_vm14, %v2798_v12, %v2799_v9  ;;  %v2812_v22 = vpop.permute.xlu1 %2811  ;;  %1287 = vmatprep.mubr.f32.mxu1 %v1848_v8  ;;  %v1857_v12 = vld [vmem:[%s3725_s9 + $0x1d0] sm:$0xff] }
 0x12c   : > { %2424 = vmatprep.subr.msk.bf16.mxu1 %vm3947_vm0, %v2368_v62  ;;  %v2377_v11 = vpack.c.bf16 %v744_v14, %v743_v17  ;;  %v2814_v15 = vunpack.i.h.bf16 %v2812_v22  ;;  %v2813_v28 = vunpack.i.l.bf16 %v2812_v22  ;;  %v2807_v19 = vpop.permute.xlu0 %2806 }
 0x12d   : > { %v2809_v49 = vunpack.i.h.bf16 %v2807_v19  ;;  %v2808_v21 = vunpack.i.l.bf16 %v2807_v19  ;;  %2376 = vmatprep.subr.msk.bf16.mxu0 %vm3947_vm0, %v2374_v10 }
 0x12e   : > { %1288 = vmatmul.mubr.f32.gmra.mrb[16].mxu1 %v1847_v16  ;;  %v746_v24 = vsel %vm724_vm14, %v2813_v28, %v2814_v15  ;;  %2379 = vmatpush1.bf16.msk.msra.mxu0 %vm3952_vm1, %v2377_v11  ;;  %v1860_v28 = vld [vmem:[%s3725_s9 + $0x1e8] sm:$0xff] }
 0x12f   : > { %2440 = vmatpush1.bf16.msk.msra.mxu1 %vm3952_vm1, %v2371_v2  ;;  %v2380_v54 = vpack.c.bf16 %v2814_v15, %v2809_v49  ;;  %v745_v27 = vsel %vm724_vm14, %v2808_v21, %v2809_v49  ;;  %v2822_v31 = vpop.permute.xlu1 %2821  ;;  %1293 = vmatprep.mubr.f32.mxu1 %v1850_v20  ;;  %v1859_v21 = vld [vmem:[%s3725_s9 + $0x1e0] sm:$0xff] }
 0x130   : > { %2425 = vmatprep.subr.msk.bf16.mxu1 %vm3947_vm0, %v2374_v10  ;;  %v2383_v6 = vpack.c.bf16 %v746_v24, %v745_v27  ;;  %v2824_v53 = vunpack.i.h.bf16 %v2822_v31  ;;  %v2823_v63 = vunpack.i.l.bf16 %v2822_v31  ;;  %v2817_v42 = vpop.permute.xlu0 %2816  ;;  %v1862_v27 = vld [vmem:[%s3725_s9 + $0x1f8] sm:$0xff]  ;;  %v1861_v31 = vld [vmem:[%s3725_s9 + $0x1f0] sm:$0xff] }
 0x131   : > { %v2819_v39 = vunpack.i.h.bf16 %v2817_v42  ;;  %v2818_v48 = vunpack.i.l.bf16 %v2817_v42  ;;  %2382 = vmatprep.subr.msk.bf16.mxu0 %vm3947_vm0, %v2380_v54  ;;  %v1993_v42 = vld [vmem:[%s3725_s9 + $0x210] sm:$0xff] }
 0x132   : > { %1294 = vmatmul.mubr.f32.gmra.mrb[18].mxu1 %v1849_v30  ;;  %v748_v18 = vsel %vm724_vm14, %v2823_v63, %v2824_v53  ;;  %2385 = vmatpush1.bf16.msk.msra.mxu0 %vm3952_vm1, %v2383_v6  ;;  %v2008_v63 = vld [vmem:[%s3725_s9 + $0x288] sm:$0xff] }
 0x133   : > { %2441 = vmatpush1.bf16.msk.msra.mxu1 %vm3952_vm1, %v2377_v11  ;;  %v2386_v25 = vpack.c.bf16 %v2824_v53, %v2819_v39  ;;  %v747_v23 = vsel %vm724_vm14, %v2818_v48, %v2819_v39  ;;  %v2832_v26 = vpop.permute.xlu1 %2831  ;;  %1299 = vmatprep.mubr.f32.mxu1 %v1852_v40  ;;  %v1994_v53 = vld [vmem:[%s3725_s9 + $0x218] sm:$0xff]  ;;  %v2007_v40 = vld [vmem:[%s3725_s9 + $0x280] sm:$0xff]  ;;  %v1996_v39 = vld [vmem:[%s3725_s9 + $0x228] sm:$0xff] }
 0x134   : > { %2426 = vmatprep.subr.msk.bf16.mxu1 %vm3947_vm0, %v2380_v54  ;;  %v2389_v4 = vpack.c.bf16 %v748_v18, %v747_v23  ;;  %v2834_v58 = vunpack.i.h.bf16 %v2832_v26  ;;  %v2833_v44 = vunpack.i.l.bf16 %v2832_v26  ;;  %v2827_v33 = vpop.permute.xlu0 %2826  ;;  %v1995_v48 = vld [vmem:[%s3725_s9 + $0x220] sm:$0xff]  ;;  %v2009_v18 = vld [vmem:[%s3725_s9 + $0x290] sm:$0xff]  ;;  %v2000_v26 = vld [vmem:[%s3725_s9 + $0x248] sm:$0xff] }
 0x135   : > { %v2829_v34 = vunpack.i.h.bf16 %v2827_v33  ;;  %v2828_v36 = vunpack.i.l.bf16 %v2827_v33  ;;  %2388 = vmatprep.subr.msk.bf16.mxu0 %vm3947_vm0, %v2386_v25  ;;  %v2011_v23 = vld [vmem:[%s3725_s9 + $0x2a0] sm:$0xff]  ;;  %v2002_v33 = vld [vmem:[%s3725_s9 + $0x258] sm:$0xff] }
 0x136   : > { %1300 = vmatmul.mubr.f32.gmra.mrb[20].mxu1 %v1851_v35  ;;  %v750_v38 = vsel %vm724_vm14, %v2833_v44, %v2834_v58  ;;  %2391 = vmatpush1.bf16.msk.msra.mxu0 %vm3952_vm1, %v2389_v4  ;;  %v2012_v35 = vld [vmem:[%s3725_s9 + $0x2a8] sm:$0xff]  ;;  %v2013_v44 = vld [vmem:[%s3725_s9 + $0x2b0] sm:$0xff] }
 0x137   : > { %2442 = vmatpush1.bf16.msk.msra.mxu1 %vm3952_vm1, %v2383_v6  ;;  %v2392_v43 = vpack.c.bf16 %v2834_v58, %v2829_v34  ;;  %v749_v45 = vsel %vm724_vm14, %v2828_v36, %v2829_v34  ;;  %v2842_v46 = vpop.permute.xlu1 %2841  ;;  %1305 = vmatprep.mubr.f32.mxu1 %v1854_v32  ;;  %v1991_v6 = vld [vmem:[%s3725_s9 + $0x200] sm:$0xff]  ;;  %v2016_v32 = vld [vmem:[%s3725_s9 + $0x2c8] sm:$0xff]  ;;  %v2001_v34 = vld [vmem:[%s3725_s9 + $0x250] sm:$0xff] }
 0x138   : > { %2427 = vmatprep.subr.msk.bf16.mxu1 %vm3947_vm0, %v2386_v25  ;;  %v2395_v0 = vpack.c.bf16 %v750_v38, %v749_v45  ;;  %v2844_v47 = vunpack.i.h.bf16 %v2842_v46  ;;  %v2843_v50 = vunpack.i.l.bf16 %v2842_v46  ;;  %v2837_v51 = vpop.permute.xlu0 %2836  ;;  %v1997_v25 = vld [vmem:[%s3725_s9 + $0x230] sm:$0xff]  ;;  %v1999_v58 = vld [vmem:[%s3725_s9 + $0x240] sm:$0xff]  ;;  %v2004_v38 = vld [vmem:[%s3725_s9 + $0x268] sm:$0xff] }
 0x139   : > { %v2839_v52 = vunpack.i.h.bf16 %v2837_v51  ;;  %v2838_v55 = vunpack.i.l.bf16 %v2837_v51  ;;  %2394 = vmatprep.subr.msk.bf16.mxu0 %vm3947_vm0, %v2392_v43  ;;  %v2015_v36 = vld [vmem:[%s3725_s9 + $0x2c0] sm:$0xff]  ;;  %v2017_v45 = vld [vmem:[%s3725_s9 + $0x2d0] sm:$0xff]  ;;  %v2006_v46 = vld [vmem:[%s3725_s9 + $0x278] sm:$0xff] }
 0x13a   : > { %1306 = vmatmul.mubr.f32.gmra.mrb[22].mxu1 %v1853_v41  ;;  %v752_v56 = vsel %vm724_vm14, %v2843_v50, %v2844_v47  ;;  %2397 = vmatpush1.bf16.msk.msra.mxu0 %vm3952_vm1, %v2395_v0  ;;  %v2018_v41 = vld [vmem:[%s3725_s9 + $0x2d8] sm:$0xff]  ;;  %v2019_v50 = vld [vmem:[%s3725_s9 + $0x2e0] sm:$0xff] }
 0x13b   : > { %2443 = vmatpush1.bf16.msk.msra.mxu1 %vm3952_vm1, %v2389_v4  ;;  %v2398_v60 = vpack.c.bf16 %v2844_v47, %v2839_v52  ;;  %v751_v61 = vsel %vm724_vm14, %v2838_v55, %v2839_v52  ;;  %v2852_v62 = vpop.permute.xlu1 %2851  ;;  %1311 = vmatprep.mubr.f32.mxu1 %v1856_v37  ;;  %v2014_v4 = vld [vmem:[%s3725_s9 + $0x2b8] sm:$0xff]  ;;  %v2005_v47 = vld [vmem:[%s3725_s9 + $0x270] sm:$0xff] }
 0x13c   : > { %2428 = vmatprep.subr.msk.bf16.mxu1 %vm3947_vm0, %v2392_v43  ;;  %v2401_v29 = vpack.c.bf16 %v752_v56, %v751_v61  ;;  %v2854_v1 = vunpack.i.h.bf16 %v2852_v62  ;;  %v2853_v2 = vunpack.i.l.bf16 %v2852_v62  ;;  %v2847_v3 = vpop.permute.xlu0 %2846  ;;  %v2003_v43 = vld [vmem:[%s3725_s9 + $0x260] sm:$0xff]  ;;  %v2022_v51 = vld [vmem:[%s3725_s9 + $0x2f8] sm:$0xff]  ;;  %v2021_v37 = vld [vmem:[%s3725_s9 + $0x2f0] sm:$0xff] }
 0x13d   : > { %v2849_v13 = vunpack.i.h.bf16 %v2847_v3  ;;  %v2848_v8 = vunpack.i.l.bf16 %v2847_v3  ;;  %2400 = vmatprep.subr.msk.bf16.mxu0 %vm3947_vm0, %v2398_v60 }
 0x13e   : > { %1312 = vmatmul.mubr.f32.gmra.mrb[24].mxu1 %v1855_v57  ;;  %v754_v9 = vsel %vm724_vm14, %v2853_v2, %v2854_v1  ;;  %2403 = vmatpush1.bf16.msk.msra.mxu0 %vm3952_vm1, %v2401_v29 }
 0x13f   : > { %2444 = vmatpush1.bf16.msk.msra.mxu1 %vm3952_vm1, %v2395_v0  ;;  %v2404_v14 = vpack.c.bf16 %v2854_v1, %v2849_v13  ;;  %v753_v16 = vsel %vm724_vm14, %v2848_v8, %v2849_v13  ;;  %1317 = vmatprep.mubr.f32.mxu1 %v1858_v7  ;;  %v2020_v0 = vld [vmem:[%s3725_s9 + $0x2e8] sm:$0xff] }
 0x140   : > { %v2862_v10 = vpop.permute.xlu1 %2861  ;;  %2429 = vmatprep.subr.msk.bf16.mxu1 %vm3947_vm0, %v2398_v60  ;;  %v2407_v17 = vpack.c.bf16 %v754_v9, %v753_v16  ;;  %v2857_v15 = vpop.permute.xlu0 %2856 }
 0x141   : > { %v2864_v22 = vunpack.i.h.bf16 %v2862_v10  ;;  %v2863_v11 = vunpack.i.l.bf16 %v2862_v10  ;;  %v2859_v19 = vunpack.i.h.bf16 %v2857_v15  ;;  %v2858_v20 = vunpack.i.l.bf16 %v2857_v15  ;;  %2406 = vmatprep.subr.msk.bf16.mxu0 %vm3947_vm0, %v2404_v14 }
 0x142   : > { %1318 = vmatmul.mubr.f32.gmra.mrb[26].mxu1 %v1857_v12  ;;  %2409 = vmatpush1.bf16.msk.msra.mxu0 %vm3952_vm1, %v2407_v17 }
 0x143   : > { %v756_v49 = vsel %vm724_vm14, %v2863_v11, %v2864_v22  ;;  %2445 = vmatpush1.bf16.msk.msra.mxu1 %vm3952_vm1, %v2401_v29  ;;  %v2410_v24 = vpack.c.bf16 %v2864_v22, %v2859_v19  ;;  %v755_v30 = vsel %vm724_vm14, %v2858_v20, %v2859_v19  ;;  %1323 = vmatprep.mubr.f32.mxu1 %v1860_v28 }
 0x144   : > { %2430 = vmatprep.subr.msk.bf16.mxu1 %vm3947_vm0, %v2404_v14  ;;  %v2413_v54 = vpack.c.bf16 %v756_v49, %v755_v30 }
 0x145   : > { %2412 = vmatprep.subr.msk.bf16.mxu0 %vm3947_vm0, %v2410_v24 }
 0x146   : > { %1324 = vmatmul.mubr.f32.gmra.mrb[28].mxu1 %v1859_v21  ;;  %2415 = vmatpush1.bf16.msk.msra.mxu0 %vm3952_vm1, %v2413_v54 }
 0x147   : > { %2446 = vmatpush1.bf16.msk.msra.mxu1 %vm3952_vm1, %v2407_v17  ;;  %1329 = vmatprep.mubr.f32.mxu1 %v1862_v27 }
 0x148   : > { %2431 = vmatprep.subr.msk.bf16.mxu1 %vm3947_vm0, %v2410_v24 }
 0x149   : > { %1595 = vmatmul.mubr.f32.vlgmr.msra.gmra.mrb[0].mxu0 %v1991_v6 }
 0x14a   : > { %1330 = vmatmul.mubr.f32.gmra.mrb[30].mxu1 %v1861_v31  ;;  %1600 = vmatprep.mubr.f32.mxu0 %v1994_v53 }
 0x14b   : > { %2447 = vmatpush1.bf16.msk.msra.mxu1 %vm3952_vm1, %v2413_v54  ;;  %1642 = vmatprep.mubr.f32.mxu1 %v2008_v63 }
 0x14d   : > { %1601 = vmatmul.mubr.f32.gmra.mrb[2].mxu0 %v1993_v42 }
 0x14e   : > { %1643 = vmatmul.mubr.f32.vlgmr.msra.gmra.mrb[32].mxu1 %v2007_v40  ;;  %1606 = vmatprep.mubr.f32.mxu0 %v1996_v39 }
 0x14f   : > { %1648 = vmatprep.mubr.f32.mxu1 %v2010_v5 }
 0x151   : > { %1607 = vmatmul.mubr.f32.gmra.mrb[4].mxu0 %v1995_v48 }
 0x152   : > { %1649 = vmatmul.mubr.f32.gmra.mrb[34].mxu1 %v2009_v18  ;;  %1612 = vmatprep.mubr.f32.mxu0 %v1998_v59 }
 0x153   : > { %1654 = vmatprep.mubr.f32.mxu1 %v2012_v35 }
 0x155   : > { %1613 = vmatmul.mubr.f32.gmra.mrb[6].mxu0 %v1997_v25 }
 0x156   : > { %1655 = vmatmul.mubr.f32.gmra.mrb[36].mxu1 %v2011_v23  ;;  %1618 = vmatprep.mubr.f32.mxu0 %v2000_v26 }
 0x157   : > { %1660 = vmatprep.mubr.f32.mxu1 %v2014_v4 }
 0x159   : > { %1619 = vmatmul.mubr.f32.gmra.mrb[8].mxu0 %v1999_v58 }
 0x15a   : > { %1661 = vmatmul.mubr.f32.gmra.mrb[38].mxu1 %v2013_v44  ;;  %1624 = vmatprep.mubr.f32.mxu0 %v2002_v33 }
 0x15b   : > { %1666 = vmatprep.mubr.f32.mxu1 %v2016_v32 }
 0x15d   : > { %1625 = vmatmul.mubr.f32.gmra.mrb[10].mxu0 %v2001_v34 }
 0x15e   : > { %1667 = vmatmul.mubr.f32.gmra.mrb[40].mxu1 %v2015_v36  ;;  %1630 = vmatprep.mubr.f32.mxu0 %v2004_v38 }
 0x15f   : > { %1672 = vmatprep.mubr.f32.mxu1 %v2018_v41 }
 0x161   : > { %1631 = vmatmul.mubr.f32.gmra.mrb[12].mxu0 %v2003_v43 }
 0x162   : > { %1673 = vmatmul.mubr.f32.gmra.mrb[42].mxu1 %v2017_v45  ;;  %1636 = vmatprep.mubr.f32.mxu0 %v2006_v46 }
 0x163   : > { %1678 = vmatprep.mubr.f32.mxu1 %v2020_v0 }
 0x165   : > { %1637 = vmatmul.mubr.f32.gmra.mrb[14].mxu0 %v2005_v47 }
 0x166   : > { %1679 = vmatmul.mubr.f32.gmra.mrb[44].mxu1 %v2019_v50 }
 0x167   : > { %1684 = vmatprep.mubr.f32.mxu1 %v2022_v51 }
 0x16a   : > { %1685 = vmatmul.mubr.f32.gmra.mrb[46].mxu1 %v2021_v37 }
 0x1ab   : > { %v1450_v52 = vpop.f32.mrb[16].mxu0 }
 0x1ac   : > { %v1452_v55 = vpop.f32.mrb[17].mxu0 }
 0x1af   : > { %v1456_v56 = vpop.f32.mrb[18].mxu0 }
 0x1b0   : > { %v1458_v57 = vpop.f32.mrb[19].mxu0 }
 0x1b3   : > { %v1462_v60 = vpop.f32.mrb[20].mxu0 }
 0x1b4   : > { %v1464_v61 = vpop.f32.mrb[21].mxu0 }
 0x1b7   : > { %v1468_v62 = vpop.f32.mrb[22].mxu0 }
 0x1b8   : > { %v1470_v29 = vpop.f32.mrb[23].mxu0 }
 0x1bb   : > { %v1474_v1 = vpop.f32.mrb[24].mxu0 }
 0x1bc   : > { %v1476_v2 = vpop.f32.mrb[25].mxu0 }
 0x1bf   : > { %v1480_v3 = vpop.f32.mrb[26].mxu0 }
 0x1c0   : > { %v1482_v7 = vpop.f32.mrb[27].mxu0 }
 0x1c3   : > { %v1486_v13 = vpop.f32.mrb[28].mxu0 }
 0x1c4   : > { %v1488_v8 = vpop.f32.mrb[29].mxu0 }
 0x1c7   : > { %v1492_v9 = vpop.f32.mrb[30].mxu0 }
 0x1c8   : > { %v1494_v12 = vpop.f32.mrb[31].mxu0 }
 0x1e1   : > { %v1241_v14 = vpop.f32.mrb[0].mxu1 }
 0x1e2   : > { %v1243_v16 = vpop.f32.mrb[1].mxu1 }
 0x1e5   : > { %v1247_v10 = vpop.f32.mrb[2].mxu1 }
 0x1e6   : > { %v4177_v17 = vpop.f32.mrb[3].mxu1 }
 0x1e9   : > { %v4179_v22 = vpop.f32.mrb[4].mxu1 }
 0x1ea   : > { %v4181_v11 = vpop.f32.mrb[5].mxu1 }
 0x1ed   : > { %v4183_v15 = vpop.f32.mrb[6].mxu1 }
 0x1ee   : > { %v4185_v28 = vpop.f32.mrb[7].mxu1 }
 0x1f1   : > { %v4187_v19 = vpop.f32.mrb[8].mxu1 }
 0x1f2   : > { %v4189_v20 = vpop.f32.mrb[9].mxu1 }
 0x1f5   : > { %v4191_v49 = vpop.f32.mrb[10].mxu1 }
 0x1f6   : > { %v4193_v21 = vpop.f32.mrb[11].mxu1 }
 0x1f9   : > { %v4195_v24 = vpop.f32.mrb[12].mxu1 }
 0x1fa   : > { %v4197_v30 = vpop.f32.mrb[13].mxu1 }
 0x1fd   : > { %v4199_v54 = vpop.f32.mrb[14].mxu1 }
 0x1fe   : > { %v4201_v27 = vpop.f32.mrb[15].mxu1 }
 0x201   : > { %v1289_v31 = vpop.f32.mrb[16].mxu1 }
 0x202   : > { %v1451_v6 = vadd.f32 %v1450_v52, %v1289_v31  ;;  %v1291_v53 = vpop.f32.mrb[17].mxu1 }
 0x203   : > { %v1453_v63 = vadd.f32 %v1452_v55, %v1291_v53 }
 0x205   : > { %v1295_v42 = vpop.f32.mrb[18].mxu1 }
 0x206   : > { %v1457_v40 = vadd.f32 %v1456_v56, %v1295_v42  ;;  %v1297_v39 = vpop.f32.mrb[19].mxu1 }
 0x207   : > { %v1459_v5 = vadd.f32 %v1458_v57, %v1297_v39 }
 0x209   : > { %v1301_v48 = vpop.f32.mrb[20].mxu1 }
 0x20a   : > { %v1463_v18 = vadd.f32 %v1462_v60, %v1301_v48  ;;  %v1303_v59 = vpop.f32.mrb[21].mxu1 }
 0x20b   : > { %v4203_v35 = vadd.f32 %v1464_v61, %v1303_v59 }
 0x20d   : > { %v1307_v25 = vpop.f32.mrb[22].mxu1 }
 0x20e   : > { %v4205_v23 = vadd.f32 %v1468_v62, %v1307_v25  ;;  %v1309_v26 = vpop.f32.mrb[23].mxu1 }
 0x20f   : > { %v4207_v4 = vadd.f32 %v1470_v29, %v1309_v26 }
 0x211   : > { %v1313_v58 = vpop.f32.mrb[24].mxu1 }
 0x212   : > { %v4211_v44 = vadd.f32 %v1474_v1, %v1313_v58  ;;  %v1315_v33 = vpop.f32.mrb[25].mxu1 }
 0x213   : > { %v4213_v32 = vadd.f32 %v1476_v2, %v1315_v33 }
 0x215   : > { %v1319_v34 = vpop.f32.mrb[26].mxu1 }
 0x216   : > { %v4215_v36 = vadd.f32 %v1480_v3, %v1319_v34  ;;  %v1321_v38 = vpop.f32.mrb[27].mxu1 }
 0x217   : > { %v4217_v41 = vadd.f32 %v1482_v7, %v1321_v38 }
 0x219   : > { %v1325_v43 = vpop.f32.mrb[28].mxu1 }
 0x21a   : > { %v4219_v45 = vadd.f32 %v1486_v13, %v1325_v43  ;;  %v1327_v46 = vpop.f32.mrb[29].mxu1 }
 0x21b   : > { %v4221_v0 = vadd.f32 %v1488_v8, %v1327_v46 }
 0x21c   : > { %v1596_v50 = vpop.f32.mrb[0].mxu0 }
 0x21d   : > { %v1331_v47 = vpop.f32.mrb[30].mxu1  ;;  %v2448_v37 = vadd.f32 %v1596_v50, %v1241_v14  ;;  %v1598_v55 = vpop.f32.mrb[1].mxu0 }
 0x21e   : > { %v4228_v51 = vadd.f32 %v1492_v9, %v1331_v47  ;;  %v1333_v52 = vpop.f32.mrb[31].mxu1  ;;  %v2449_v57 = vadd.f32 %v1598_v55, %v1243_v16 }
 0x21f   : > { %v4230_v56 = vadd.f32 %v1494_v12, %v1333_v52  ;;  %1723 = vst [vmem:[%s4226_s30] sm:$0xff] %v2448_v37 }
 0x220   : > { %1725 = vst.msk [vmem:[%s4226_s30 + $0x8] sm:$0xff] %vm1724_vm2, %v2449_v57  ;;  %v1602_v60 = vpop.f32.mrb[2].mxu0 }
 0x221   : > { %v1644_v61 = vpop.f32.mrb[32].mxu1  ;;  %v2450_v62 = vadd.f32 %v1602_v60, %v1247_v10  ;;  %v1604_v1 = vpop.f32.mrb[3].mxu0 }
 0x222   : > { %v1707_v29 = vadd.f32 %v1644_v61, %v1451_v6  ;;  %v1646_v2 = vpop.f32.mrb[33].mxu1  ;;  %v2451_v3 = vadd.f32 %v1604_v1, %v4177_v17 }
 0x223   : > { %v1708_v7 = vadd.f32 %v1646_v2, %v1453_v63  ;;  %1726 = vst [vmem:[%s4226_s30 + $0x10] sm:$0xff] %v2450_v62 }
 0x224   : > { %1740 = vst [vmem:[%s4226_s30 + $0x80] sm:$0xff] %v1707_v29  ;;  %1727 = vst.msk [vmem:[%s4226_s30 + $0x18] sm:$0xff] %vm1724_vm2, %v2451_v3  ;;  %v1608_v13 = vpop.f32.mrb[4].mxu0 }
 0x225   : > { %1741 = vst.msk [vmem:[%s4226_s30 + $0x88] sm:$0xff] %vm1724_vm2, %v1708_v7  ;;  %v1650_v8 = vpop.f32.mrb[34].mxu1  ;;  %v2452_v9 = vadd.f32 %v1608_v13, %v4179_v22  ;;  %v1610_v14 = vpop.f32.mrb[5].mxu0 }
 0x226   : > { %v1709_v12 = vadd.f32 %v1650_v8, %v1457_v40  ;;  %v1652_v16 = vpop.f32.mrb[35].mxu1  ;;  %v2453_v10 = vadd.f32 %v1610_v14, %v4181_v11 }
 0x227   : > { %v1710_v17 = vadd.f32 %v1652_v16, %v1459_v5  ;;  %1728 = vst [vmem:[%s4226_s30 + $0x20] sm:$0xff] %v2452_v9 }
 0x228   : > { %1742 = vst [vmem:[%s4226_s30 + $0x90] sm:$0xff] %v1709_v12  ;;  %1729 = vst.msk [vmem:[%s4226_s30 + $0x28] sm:$0xff] %vm1724_vm2, %v2453_v10  ;;  %v1614_v31 = vpop.f32.mrb[6].mxu0 }
 0x229   : > { %1743 = vst.msk [vmem:[%s4226_s30 + $0x98] sm:$0xff] %vm1724_vm2, %v1710_v17  ;;  %v1656_v6 = vpop.f32.mrb[36].mxu1  ;;  %v2454_v22 = vadd.f32 %v1614_v31, %v4183_v15  ;;  %v1616_v63 = vpop.f32.mrb[7].mxu0 }
 0x22a   : > { %v1711_v53 = vadd.f32 %v1656_v6, %v1463_v18  ;;  %v1658_v42 = vpop.f32.mrb[37].mxu1  ;;  %v2455_v11 = vadd.f32 %v1616_v63, %v4185_v28 }
 0x22b   : > { %v1712_v40 = vadd.f32 %v1658_v42, %v4203_v35  ;;  %1730 = vst [vmem:[%s4226_s30 + $0x30] sm:$0xff] %v2454_v22 }
 0x22c   : > { %1744 = vst [vmem:[%s4226_s30 + $0xa0] sm:$0xff] %v1711_v53  ;;  %1731 = vst.msk [vmem:[%s4226_s30 + $0x38] sm:$0xff] %vm1724_vm2, %v2455_v11  ;;  %v1620_v39 = vpop.f32.mrb[8].mxu0 }
 0x22d   : > { %1745 = vst.msk [vmem:[%s4226_s30 + $0xa8] sm:$0xff] %vm1724_vm2, %v1712_v40  ;;  %v1662_v5 = vpop.f32.mrb[38].mxu1  ;;  %v2456_v15 = vadd.f32 %v1620_v39, %v4187_v19  ;;  %v1622_v18 = vpop.f32.mrb[9].mxu0 }
 0x22e   : > { %v1713_v48 = vadd.f32 %v1662_v5, %v4205_v23  ;;  %v1664_v59 = vpop.f32.mrb[39].mxu1  ;;  %v2457_v28 = vadd.f32 %v1622_v18, %v4189_v20 }
 0x22f   : > { %v1714_v35 = vadd.f32 %v1664_v59, %v4207_v4  ;;  %1732 = vst [vmem:[%s4226_s30 + $0x40] sm:$0xff] %v2456_v15 }
 0x230   : > { %1746 = vst [vmem:[%s4226_s30 + $0xb0] sm:$0xff] %v1713_v48  ;;  %1733 = vst.msk [vmem:[%s4226_s30 + $0x48] sm:$0xff] %vm1724_vm2, %v2457_v28  ;;  %v1626_v25 = vpop.f32.mrb[10].mxu0 }
 0x231   : > { %1747 = vst.msk [vmem:[%s4226_s30 + $0xb8] sm:$0xff] %vm1724_vm2, %v1714_v35  ;;  %v1668_v19 = vpop.f32.mrb[40].mxu1  ;;  %v2458_v23 = vadd.f32 %v1626_v25, %v4191_v49  ;;  %v1628_v58 = vpop.f32.mrb[11].mxu0 }
 0x232   : > { %v1715_v26 = vadd.f32 %v1668_v19, %v4211_v44  ;;  %v1670_v33 = vpop.f32.mrb[41].mxu1  ;;  %v2459_v20 = vadd.f32 %v1628_v58, %v4193_v21 }
 0x233   : > { %v1716_v4 = vadd.f32 %v1670_v33, %v4213_v32  ;;  %1734 = vst [vmem:[%s4226_s30 + $0x50] sm:$0xff] %v2458_v23 }
 0x234   : > { %1748 = vst [vmem:[%s4226_s30 + $0xc0] sm:$0xff] %v1715_v26  ;;  %1735 = vst.msk [vmem:[%s4226_s30 + $0x58] sm:$0xff] %vm1724_vm2, %v2459_v20  ;;  %v1632_v34 = vpop.f32.mrb[12].mxu0 }
 0x235   : > { %1749 = vst.msk [vmem:[%s4226_s30 + $0xc8] sm:$0xff] %vm1724_vm2, %v1716_v4  ;;  %v1674_v49 = vpop.f32.mrb[42].mxu1  ;;  %v2460_v44 = vadd.f32 %v1632_v34, %v4195_v24  ;;  %v1634_v43 = vpop.f32.mrb[13].mxu0 }
 0x236   : > { %v1717_v38 = vadd.f32 %v1674_v49, %v4215_v36  ;;  %v1676_v46 = vpop.f32.mrb[43].mxu1  ;;  %v2461_v21 = vadd.f32 %v1634_v43, %v4197_v30 }
 0x237   : > { %v1718_v32 = vadd.f32 %v1676_v46, %v4217_v41  ;;  %1736 = vst [vmem:[%s4226_s30 + $0x60] sm:$0xff] %v2460_v44 }
 0x238   : > { %1750 = vst [vmem:[%s4226_s30 + $0xd0] sm:$0xff] %v1717_v38  ;;  %1737 = vst.msk [vmem:[%s4226_s30 + $0x68] sm:$0xff] %vm1724_vm2, %v2461_v21  ;;  %v1638_v47 = vpop.f32.mrb[14].mxu0 }
 0x239   : > { %1751 = vst.msk [vmem:[%s4226_s30 + $0xd8] sm:$0xff] %vm1724_vm2, %v1718_v32  ;;  %v1680_v24 = vpop.f32.mrb[44].mxu1  ;;  %v2462_v36 = vadd.f32 %v1638_v47, %v4199_v54  ;;  %v1640_v37 = vpop.f32.mrb[15].mxu0 }
 0x23a   : > { %v1719_v50 = vadd.f32 %v1680_v24, %v4219_v45  ;;  %v1682_v30 = vpop.f32.mrb[45].mxu1  ;;  %v2463_v52 = vadd.f32 %v1640_v37, %v4201_v27 }
 0x23b   : > { %v1720_v41 = vadd.f32 %v1682_v30, %v4221_v0  ;;  %1738 = vst [vmem:[%s4226_s30 + $0x70] sm:$0xff] %v2462_v36 }
 0x23c   : > { %1752 = vst [vmem:[%s4226_s30 + $0xe0] sm:$0xff] %v1719_v50  ;;  %1739 = vst.msk [vmem:[%s4226_s30 + $0x78] sm:$0xff] %vm1724_vm2, %v2463_v52 }
 0x23d   : > { %1753 = vst.msk [vmem:[%s4226_s30 + $0xe8] sm:$0xff] %vm1724_vm2, %v1720_v41  ;;  %v1686_v55 = vpop.f32.mrb[46].mxu1 }
 0x23e   : > { %v1721_v57 = vadd.f32 %v1686_v55, %v4228_v51  ;;  %v1688_v60 = vpop.f32.mrb[47].mxu1 }
 0x23f   : > { %v1722_v54 = vadd.f32 %v1688_v60, %v4230_v56 }
 0x240   : > { %1754 = vst [vmem:[%s4226_s30 + $0xf0] sm:$0xff] %v1721_v57 }
 0x241   : > { %1755 = vst.msk [vmem:[%s4226_s30 + $0xf8] sm:$0xff] %vm1724_vm2, %v1722_v54 }
 0x242 PF: > { %p9_p9 = scmp.ge.s32.totalorder %s2924_s13, 4   ;;  %s4450_s9 = smov %s2883_s10 }
 0x243   : > { %s4451_s10 = smov %s2933_s16  ;;  %s4452_s11 = smov %s2924_s13 }
 0x244   :  { %11 = sbr.rel (!%p9_p9) target bundleno = 2 (0x2), region = 88 }

</bundles_post_ra>
